<compile_context>
chip_gen: v7x
topology: tpu7x:2x2x1
jax: 0.10.0
libtpu: 0.0.40
codegen_flags: <defaults>
</compile_context>

<pallas_src>
import jax
import jax.numpy as jnp
from jax.experimental import pallas as pl
from jax.experimental.pallas import tpu as pltpu

# Hyperparameters implied by the module's __init__ (small / TPU friendly).
V = 16          # embed_num  (vocab size)
D = 32          # embed_dim
C = 2           # class_num
N_LAYERS = 2    # num_layers (kernel below is specialized to 2)
H = 32          # hidden_size
B = 8           # batch
T = 8           # sequence length


# ----------------------------------------------------------------------------
# Fused Pallas kernel: embedding -> BiLSTM layer 0 -> BiLSTM layer 1 -> FC
# ----------------------------------------------------------------------------
def _ts_birnn_kernel(onehot_ref, table0_ref, wh0_ref, b0_ref,
                     wx1_ref, wh1_ref, b1_ref, fcw_ref, fcb_ref,
                     out_ref, xg_ref, h01_ref):
    """Whole forward pass in one kernel.

    onehot_ref: (T*B, V)   time-major one-hot ids (row r = t*B + b), f32
    table0_ref: (V, 8H)    embed @ [w_ih_f0.T | w_ih_r0.T]   (i/f/o cols *0.5)
    wh{l}_ref:  (H, 8H)    [w_hh_f.T | w_hh_r.T]             (i/f/o cols *0.5)
    wx1_ref:    (2H, 8H)   [w_ih_f1.T | w_ih_r1.T]           (i/f/o cols *0.5)
    b{l}_ref:   (1, 8H)    [b_ih_f+b_hh_f | b_ih_r+b_hh_r]   (i/f/o cols *0.5)
    fcw_ref:    (2H, C)    fc weight, transposed
    fcb_ref:    (1, C)     fc bias
    out_ref:    (B, C)     logits
    xg_ref:     (T*B, 8H)  VMEM scratch: batched x->gates pre-activations
    h01_ref:    (T*B, 2H)  VMEM scratch: layer-0 bidirectional outputs
    """
    B_ = out_ref.shape[0]
    TB = onehot_ref.shape[0]
    T_ = TB // B_
    H8 = wh0_ref.shape[1]
    H_ = H8 // 8
    H2, H3, H4 = 2 * H_, 3 * H_, 4 * H_

    # Hoisted gate-recovery masks: i/f/o lanes were pre-scaled by 0.5, so
    # sigmoid(x) = 0.5 * tanh(x/2) + 0.5 ; g lanes keep tanh(x).
    lane = jax.lax.broadcasted_iota(jnp.int32, (2 * B_, H4), 1)
    is_g = jnp.logical_and(lane >= H2, lane < H3)
    g_mul = jnp.where(is_g, jnp.float32(1.0), jnp.float32(0.5))
    g_add = jnp.where(is_g, jnp.float32(0.0), jnp.float32(0.5))

    def run_layer(w_hh, write_out):
        """Unrolled bidirectional recurrence reading x-gate terms from xg_ref.

        Rows 0:B of the (2B, .) state carry the forward direction, rows B:2B the
        reverse direction (which processes time index T-1-t at step t).
        """
        h = jnp.zeros((2 * B_, H_), jnp.float32)
        c = jnp.zeros((2 * B_, H_), jnp.float32)
        h_r_first = None
        for t in range(T_):
            rt = T_ - 1 - t
            # Only matmul on the serial chain: (2B, H) x (H, 8H).
            gates_h = jnp.dot(h, w_hh, preferred_element_type=jnp.float32)
            # Precomputed x-contribution (+bias): fwd lanes 0:4H at row t*B,
            # rev lanes 4H:8H at row (T-1-t)*B.  Static, vreg-aligned slices.
            xf = xg_ref[t * B_:(t + 1) * B_, 0:H4]
            xr = xg_ref[rt * B_:(rt + 1) * B_, H4:H8]
            g = jnp.concatenate([gates_h[:B_, 0:H4] + xf,
                                 gates_h[B_:, H4:H8] + xr], axis=0)   # (2B, 4H)
            # Single EUP pass over the combined gate block.
            th = jnp.tanh(g)
            act = th * g_mul + g_add          # i/f/o -> sigmoid, g -> tanh
            # PyTorch gate order: i, f, g, o. Combined fwd+rev cell update.
            c = act[:, H_:H2] * c + act[:, 0:H_] * act[:, H2:H3]
            h = act[:, H3:H4] * jnp.tanh(c)
            if write_out:
                h01_ref[t * B_:(t + 1) * B_, 0:H_] = h[:B_]
                h01_ref[rt * B_:(rt + 1) * B_, H_:2 * H_] = h[B_:]
            if t == 0:
                h_r_first = h[B_:]            # reverse hidden at time T-1
        return h[:B_], h_r_first

    # ---- Layer 0: batched x->gates projection (embedding already folded) ----
    xg_ref[...] = (jnp.dot(onehot_ref[...], table0_ref[...],
                           preferred_element_type=jnp.float32) + b0_ref[...])
    run_layer(wh0_ref[...], write_out=True)
    # TODO(synk): inter-layer dropout is train-time only; eval forward is identity.

    # ---- Layer 1: batched x->gates projection over layer-0 outputs ----------
    xg_ref[...] = (jnp.dot(h01_ref[...], wx1_ref[...],
                           preferred_element_type=jnp.float32) + b1_ref[...])
    h_f_last, h_r_first = run_layer(wh1_ref[...], write_out=False)

    # out[:, -1, :] == [fwd hidden at t=T-1 | rev hidden at time index T-1]
    last = jnp.concatenate([h_f_last, h_r_first], axis=1)             # (B, 2H)
    out_ref[...] = (jnp.dot(last, fcw_ref[...],
                            preferred_element_type=jnp.float32) + fcb_ref[...])


def ts_birnn_forward(prep, x_ids):
    """Single fused pallas_call for the whole TS_BiRNN forward pass."""
    B_, T_ = x_ids.shape
    V_ = prep["table0"].shape[0]
    H8 = prep["wh0"].shape[1]
    H_ = H8 // 8
    C_ = prep["fcw"].shape[1]
    # Time-major, lane-dense one-hot ids (row r = t*B + b); tiny (T*B, V) f32.
    ids_tm = jnp.transpose(x_ids).reshape(T_ * B_)
    onehot = jax.nn.one_hot(ids_tm, V_, dtype=jnp.float32)
    return pl.pallas_call(
        _ts_birnn_kernel,
        out_shape=jax.ShapeDtypeStruct((B_, C_), jnp.float32),
        in_specs=[pl.BlockSpec(memory_space=pltpu.MemorySpace.VMEM)] * 9,
        out_specs=pl.BlockSpec(memory_space=pltpu.MemorySpace.VMEM),
        scratch_shapes=[
            pltpu.VMEM((T_ * B_, H8), jnp.float32),      # x->gates pre-activations
            pltpu.VMEM((T_ * B_, 2 * H_), jnp.float32),  # layer-0 outputs
        ],
    )(onehot, prep["table0"], prep["wh0"], prep["b0"],
      prep["wx1"], prep["wh1"], prep["b1"], prep["fcw"], prep["fcb"])


# ----------------------------------------------------------------------------
# Parameter init (PyTorch-style layout) + one-time packing for the kernel
# ----------------------------------------------------------------------------
def init_params(key):
    keys = iter(jax.random.split(key, 64))
    params = {}
    params["embed"] = jax.random.normal(next(keys), (V, D), jnp.float32)

    k_lstm = 1.0 / (H ** 0.5)
    lstm = []
    for layer in range(N_LAYERS):
        d_in = D if layer == 0 else 2 * H
        dirs = []
        for _direction in range(2):
            w_ih = jax.random.uniform(next(keys), (4 * H, d_in), jnp.float32,
                                      -k_lstm, k_lstm)
            w_hh = jax.random.uniform(next(keys), (4 * H, H), jnp.float32,
                                      -k_lstm, k_lstm)
            b_ih = jax.random.uniform(next(keys), (4 * H,), jnp.float32,
                                      -k_lstm, k_lstm)
            b_hh = jax.random.uniform(next(keys), (4 * H,), jnp.float32,
                                      -k_lstm, k_lstm)
            dirs.append((w_ih, w_hh, b_ih, b_hh))
        lstm.append(dirs)
    params["lstm"] = lstm

    k_fc = 1.0 / ((2 * H) ** 0.5)
    params["fc_w"] = jax.random.uniform(next(keys), (C, 2 * H), jnp.float32,
                                        -k_fc, k_fc)
    params["fc_b"] = jax.random.uniform(next(keys), (C,), jnp.float32,
                                        -k_fc, k_fc)
    return params


def prepare_params(params):
    """One-time packing for the kernel.

    Per layer:  W_x = [w_ih_f.T | w_ih_r.T]  (Din, 8H)
                W_h = [w_hh_f.T | w_hh_r.T]  (H,   8H)
                b   = [b_ih_f+b_hh_f | b_ih_r+b_hh_r]  (1, 8H)
    with the i/f/o gate columns pre-scaled by 0.5 (sigmoid-via-tanh trick).
    The embedding is folded into layer 0: table0 = embed @ W_x0  (V, 8H).
    """
    assert N_LAYERS == 2, "fused kernel is specialized to num_layers == 2"
    hi = jax.lax.Precision.HIGHEST

    gate = jnp.arange(4 * H) // H                       # 0=i, 1=f, 2=g, 3=o
    scale4 = jnp.where(gate == 2, 1.0, 0.5).astype(jnp.float32)
    scale8 = jnp.concatenate([scale4, scale4])          # per packed column

    def pack_layer(dirs):
        (wif, whf, bif, bhf), (wir, whr, bir, bhr) = dirs
        w_x = jnp.concatenate([wif.T, wir.T], axis=1) * scale8          # (Din, 8H)
        w_h = jnp.concatenate([whf.T, whr.T], axis=1) * scale8          # (H, 8H)
        b = jnp.concatenate([bif + bhf, bir + bhr]).reshape(1, -1) * scale8
        return w_x, w_h, b

    wx0, wh0, b0 = pack_layer(params["lstm"][0])
    wx1, wh1, b1 = pack_layer(params["lstm"][1])
    return {
        "table0": jnp.dot(params["embed"], wx0, precision=hi),          # (V, 8H)
        "wh0": wh0, "b0": b0,
        "wx1": wx1, "wh1": wh1, "b1": b1,
        "fcw": params["fc_w"].T,                                        # (2H, C)
        "fcb": params["fc_b"].reshape(1, -1),                           # (1, C)
    }


# ----------------------------------------------------------------------------
# Pure-JAX reference for verification (matches PyTorch semantics)
# ----------------------------------------------------------------------------
def _lstm_dir_ref(x_tm, w_ih, w_hh, b_ih, b_hh):
    hi = jax.lax.Precision.HIGHEST
    T_, B_, _ = x_tm.shape
    H_ = w_hh.shape[1]
    h = jnp.zeros((B_, H_), jnp.float32)
    c = jnp.zeros((B_, H_), jnp.float32)
    outs = []
    for t in range(T_):
        gates = (jnp.dot(x_tm[t], w_ih.T, precision=hi) + b_ih
                 + jnp.dot(h, w_hh.T, precision=hi) + b_hh)
        i = jax.nn.sigmoid(gates[:, :H_])
        f = jax.nn.sigmoid(gates[:, H_:2 * H_])
        g = jnp.tanh(gates[:, 2 * H_:3 * H_])
        o = jax.nn.sigmoid(gates[:, 3 * H_:4 * H_])
        c = f * c + i * g
        h = o * jnp.tanh(c)
        outs.append(h)
    return jnp.stack(outs)


def ts_birnn_ref(params, x_ids):
    hi = jax.lax.Precision.HIGHEST
    emb = jnp.take(params["embed"], x_ids, axis=0)
    inp = jnp.transpose(emb, (1, 0, 2))
    for layer in range(N_LAYERS):
        outs = []
        for direction, (w_ih, w_hh, b_ih, b_hh) in enumerate(params["lstm"][layer]):
            x_dir = inp if direction == 0 else inp[::-1]
            h_seq = _lstm_dir_ref(x_dir, w_ih, w_hh, b_ih, b_hh)
            if direction == 1:
                h_seq = h_seq[::-1]
            outs.append(h_seq)
        inp = jnp.concatenate(outs, axis=-1)
    last = inp[-1]
    return jnp.dot(last, params["fc_w"].T, precision=hi) + params["fc_b"]


# ----------------------------------------------------------------------------
if __name__ == "__main__":
    key = jax.random.PRNGKey(0)
    pkey, dkey = jax.random.split(key)
    params = init_params(pkey)
    prep = prepare_params(params)
    x = jax.random.randint(dkey, (B, T), 0, V, dtype=jnp.int32)

    fwd = jax.jit(ts_birnn_forward)
    logits = fwd(prep, x)
    jax.block_until_ready(logits)

    ref = ts_birnn_ref(params, x)
    assert logits.shape == (B, C)
    max_err = float(jnp.max(jnp.abs(logits - ref)))
    # Embedding folding / sigmoid-via-tanh change rounding slightly; 2e-3 still
    # catches any semantic bug (errors there would be O(0.1-1)).
    assert max_err < 2e-3, f"Pallas output diverges from reference (max err {max_err})"

    print("KERNEL_OK")
</pallas_src>

<mosaic_0001>
module attributes {stable_mosaic.version = 11 : i64} {
  func.func @_ts_birnn_kernel(%arg0: memref<64x16xf32, #tpu.memory_space<vmem>>, %arg1: memref<16x256xf32, #tpu.memory_space<vmem>>, %arg2: memref<32x256xf32, #tpu.memory_space<vmem>>, %arg3: memref<1x256xf32, #tpu.memory_space<vmem>>, %arg4: memref<64x256xf32, #tpu.memory_space<vmem>>, %arg5: memref<32x256xf32, #tpu.memory_space<vmem>>, %arg6: memref<1x256xf32, #tpu.memory_space<vmem>>, %arg7: memref<64x2xf32, #tpu.memory_space<vmem>>, %arg8: memref<1x2xf32, #tpu.memory_space<vmem>>, %arg9: memref<8x2xf32, #tpu.memory_space<vmem>>, %arg10: memref<64x256xf32, #tpu.memory_space<vmem>>, %arg11: memref<64x64xf32, #tpu.memory_space<vmem>>) attributes {dimension_semantics = [], scalar_prefetch = 0 : i64, scratch_operands = 2 : i64, tpu.core_type = #tpu.core_type<tc>} {
    %0 = tpu.iota {dimensions = array<i32: 1>} : vector<16x128xi32>
    %c64_i32 = arith.constant 64 : i32
    %1 = vector.broadcast %c64_i32 : i32 to vector<16x128xi32>
    %2 = arith.cmpi sge, %0, %1 : vector<16x128xi32>
    %c96_i32 = arith.constant 96 : i32
    %3 = vector.broadcast %c96_i32 : i32 to vector<16x128xi32>
    %4 = arith.cmpi slt, %0, %3 : vector<16x128xi32>
    %5 = arith.andi %2, %4 : vector<16x128xi1>
    %cst = arith.constant 1.000000e+00 : f32
    %cst_0 = arith.constant 5.000000e-01 : f32
    %6 = vector.broadcast %cst : f32 to vector<16x128xf32>
    %7 = vector.broadcast %cst_0 : f32 to vector<16x128xf32>
    %8 = arith.select %5, %6, %7 : vector<16x128xi1>, vector<16x128xf32>
    %cst_1 = arith.constant 0.000000e+00 : f32
    %cst_2 = arith.constant 5.000000e-01 : f32
    %9 = vector.broadcast %cst_1 : f32 to vector<16x128xf32>
    %10 = vector.broadcast %cst_2 : f32 to vector<16x128xf32>
    %11 = arith.select %5, %9, %10 : vector<16x128xi1>, vector<16x128xf32>
    %c0 = arith.constant 0 : index
    %c0_3 = arith.constant 0 : index
    %12 = vector.load %arg0[%c0, %c0_3] : memref<64x16xf32, #tpu.memory_space<vmem>>, vector<64x16xf32>
    %c0_4 = arith.constant 0 : index
    %c0_5 = arith.constant 0 : index
    %13 = vector.load %arg1[%c0_4, %c0_5] : memref<16x256xf32, #tpu.memory_space<vmem>>, vector<16x256xf32>
    %cst_6 = arith.constant dense<0.000000e+00> : vector<64x256xf32>
    %14 = tpu.matmul %12, %13, %cst_6 {dimension_numbers = #tpu.dot_dimension_numbers<[1], [0], [0], [1], [0, 0, 1, 1], [], []>} : vector<64x16xf32>, vector<16x256xf32>, vector<64x256xf32> -> vector<64x256xf32>
    %c0_7 = arith.constant 0 : index
    %c0_8 = arith.constant 0 : index
    %15 = vector.load %arg3[%c0_7, %c0_8] : memref<1x256xf32, #tpu.memory_space<vmem>>, vector<1x256xf32>
    %16 = vector.broadcast %15 : vector<1x256xf32> to vector<64x256xf32>
    %17 = arith.addf %14, %16 : vector<64x256xf32>
    %c0_9 = arith.constant 0 : index
    %c0_10 = arith.constant 0 : index
    %18 = vector.load %arg10[%c0_9, %c0_10] : memref<64x256xf32, #tpu.memory_space<vmem>>, vector<64x256xf32>
    tpu.vector_store %arg10[%c0_9, %c0_10], %17 {strides = array<i32>} : memref<64x256xf32, #tpu.memory_space<vmem>>, vector<64x256xf32>,
    %c0_11 = arith.constant 0 : index
    %c0_12 = arith.constant 0 : index
    %19 = vector.load %arg2[%c0_11, %c0_12] : memref<32x256xf32, #tpu.memory_space<vmem>>, vector<32x256xf32>
    %cst_13 = arith.constant 0.000000e+00 : f32
    %20 = vector.broadcast %cst_13 : f32 to vector<16x32xf32>
    %cst_14 = arith.constant 0.000000e+00 : f32
    %21 = vector.broadcast %cst_14 : f32 to vector<16x32xf32>
    %cst_15 = arith.constant dense<0.000000e+00> : vector<16x256xf32>
    %22 = tpu.matmul %20, %19, %cst_15 {dimension_numbers = #tpu.dot_dimension_numbers<[1], [0], [0], [1], [0, 0, 1, 1], [], []>} : vector<16x32xf32>, vector<32x256xf32>, vector<16x256xf32> -> vector<16x256xf32>
    %c0_16 = arith.constant 0 : index
    %c0_17 = arith.constant 0 : index
    %23 = vector.load %arg10[%c0_16, %c0_17] : memref<64x256xf32, #tpu.memory_space<vmem>>, vector<8x128xf32>
    %c56 = arith.constant 56 : index
    %c128 = arith.constant 128 : index
    %24 = vector.load %arg10[%c56, %c128] : memref<64x256xf32, #tpu.memory_space<vmem>>, vector<8x128xf32>
    %25 = vector.extract_strided_slice %22 {offsets = [0, 0], sizes = [8, 128], strides = [1, 1]} : vector<16x256xf32> to vector<8x128xf32>
    %26 = arith.addf %25, %23 : vector<8x128xf32>
    %27 = vector.extract_strided_slice %22 {offsets = [8, 128], sizes = [8, 128], strides = [1, 1]} : vector<16x256xf32> to vector<8x128xf32>
    %28 = arith.addf %27, %24 : vector<8x128xf32>
    %29 = tpu.concatenate %26, %28 in 0 : vector<8x128xf32>, vector<8x128xf32> -> vector<16x128xf32>
    %30 = math.tanh %29 : vector<16x128xf32>
    %31 = arith.mulf %30, %8 : vector<16x128xf32>
    %32 = arith.addf %31, %11 : vector<16x128xf32>
    %33 = vector.extract_strided_slice %32 {offsets = [0, 32], sizes = [16, 32], strides = [1, 1]} : vector<16x128xf32> to vector<16x32xf32>
    %34 = arith.mulf %33, %21 : vector<16x32xf32>
    %35 = vector.extract_strided_slice %32 {offsets = [0, 0], sizes = [16, 32], strides = [1, 1]} : vector<16x128xf32> to vector<16x32xf32>
    %36 = vector.extract_strided_slice %32 {offsets = [0, 64], sizes = [16, 32], strides = [1, 1]} : vector<16x128xf32> to vector<16x32xf32>
    %37 = arith.mulf %35, %36 : vector<16x32xf32>
    %38 = arith.addf %34, %37 : vector<16x32xf32>
    %39 = vector.extract_strided_slice %32 {offsets = [0, 96], sizes = [16, 32], strides = [1, 1]} : vector<16x128xf32> to vector<16x32xf32>
    %40 = math.tanh %38 : vector<16x32xf32>
    %41 = arith.mulf %39, %40 : vector<16x32xf32>
    %42 = vector.extract_strided_slice %41 {offsets = [0, 0], sizes = [8, 32], strides = [1, 1]} : vector<16x32xf32> to vector<8x32xf32>
    %c0_18 = arith.constant 0 : index
    %c0_19 = arith.constant 0 : index
    %43 = vector.load %arg11[%c0_18, %c0_19] : memref<64x64xf32, #tpu.memory_space<vmem>>, vector<8x32xf32>
    tpu.vector_store %arg11[%c0_18, %c0_19], %42 {strides = array<i32>} : memref<64x64xf32, #tpu.memory_space<vmem>>, vector<8x32xf32>,
    %44 = vector.extract_strided_slice %41 {offsets = [8, 0], sizes = [8, 32], strides = [1, 1]} : vector<16x32xf32> to vector<8x32xf32>
    %c56_20 = arith.constant 56 : index
    %c32 = arith.constant 32 : index
    %45 = vector.load %arg11[%c56_20, %c32] : memref<64x64xf32, #tpu.memory_space<vmem>>, vector<8x32xf32>
    tpu.vector_store %arg11[%c56_20, %c32], %44 {strides = array<i32>} : memref<64x64xf32, #tpu.memory_space<vmem>>, vector<8x32xf32>,
    %cst_21 = arith.constant dense<0.000000e+00> : vector<16x256xf32>
    %46 = tpu.matmul %41, %19, %cst_21 {dimension_numbers = #tpu.dot_dimension_numbers<[1], [0], [0], [1], [0, 0, 1, 1], [], []>} : vector<16x32xf32>, vector<32x256xf32>, vector<16x256xf32> -> vector<16x256xf32>
    %c8 = arith.constant 8 : index
    %c0_22 = arith.constant 0 : index
    %47 = vector.load %arg10[%c8, %c0_22] : memref<64x256xf32, #tpu.memory_space<vmem>>, vector<8x128xf32>
    %c48 = arith.constant 48 : index
    %c128_23 = arith.constant 128 : index
    %48 = vector.load %arg10[%c48, %c128_23] : memref<64x256xf32, #tpu.memory_space<vmem>>, vector<8x128xf32>
    %49 = vector.extract_strided_slice %46 {offsets = [0, 0], sizes = [8, 128], strides = [1, 1]} : vector<16x256xf32> to vector<8x128xf32>
    %50 = arith.addf %49, %47 : vector<8x128xf32>
    %51 = vector.extract_strided_slice %46 {offsets = [8, 128], sizes = [8, 128], strides = [1, 1]} : vector<16x256xf32> to vector<8x128xf32>
    %52 = arith.addf %51, %48 : vector<8x128xf32>
    %53 = tpu.concatenate %50, %52 in 0 : vector<8x128xf32>, vector<8x128xf32> -> vector<16x128xf32>
    %54 = math.tanh %53 : vector<16x128xf32>
    %55 = arith.mulf %54, %8 : vector<16x128xf32>
    %56 = arith.addf %55, %11 : vector<16x128xf32>
    %57 = vector.extract_strided_slice %56 {offsets = [0, 32], sizes = [16, 32], strides = [1, 1]} : vector<16x128xf32> to vector<16x32xf32>
    %58 = arith.mulf %57, %38 : vector<16x32xf32>
    %59 = vector.extract_strided_slice %56 {offsets = [0, 0], sizes = [16, 32], strides = [1, 1]} : vector<16x128xf32> to vector<16x32xf32>
    %60 = vector.extract_strided_slice %56 {offsets = [0, 64], sizes = [16, 32], strides = [1, 1]} : vector<16x128xf32> to vector<16x32xf32>
    %61 = arith.mulf %59, %60 : vector<16x32xf32>
    %62 = arith.addf %58, %61 : vector<16x32xf32>
    %63 = vector.extract_strided_slice %56 {offsets = [0, 96], sizes = [16, 32], strides = [1, 1]} : vector<16x128xf32> to vector<16x32xf32>
    %64 = math.tanh %62 : vector<16x32xf32>
    %65 = arith.mulf %63, %64 : vector<16x32xf32>
    %66 = vector.extract_strided_slice %65 {offsets = [0, 0], sizes = [8, 32], strides = [1, 1]} : vector<16x32xf32> to vector<8x32xf32>
    %c8_24 = arith.constant 8 : index
    %c0_25 = arith.constant 0 : index
    %67 = vector.load %arg11[%c8_24, %c0_25] : memref<64x64xf32, #tpu.memory_space<vmem>>, vector<8x32xf32>
    tpu.vector_store %arg11[%c8_24, %c0_25], %66 {strides = array<i32>} : memref<64x64xf32, #tpu.memory_space<vmem>>, vector<8x32xf32>,
    %68 = vector.extract_strided_slice %65 {offsets = [8, 0], sizes = [8, 32], strides = [1, 1]} : vector<16x32xf32> to vector<8x32xf32>
    %c48_26 = arith.constant 48 : index
    %c32_27 = arith.constant 32 : index
    %69 = vector.load %arg11[%c48_26, %c32_27] : memref<64x64xf32, #tpu.memory_space<vmem>>, vector<8x32xf32>
    tpu.vector_store %arg11[%c48_26, %c32_27], %68 {strides = array<i32>} : memref<64x64xf32, #tpu.memory_space<vmem>>, vector<8x32xf32>,
    %cst_28 = arith.constant dense<0.000000e+00> : vector<16x256xf32>
    %70 = tpu.matmul %65, %19, %cst_28 {dimension_numbers = #tpu.dot_dimension_numbers<[1], [0], [0], [1], [0, 0, 1, 1], [], []>} : vector<16x32xf32>, vector<32x256xf32>, vector<16x256xf32> -> vector<16x256xf32>
    %c16 = arith.constant 16 : index
    %c0_29 = arith.constant 0 : index
    %71 = vector.load %arg10[%c16, %c0_29] : memref<64x256xf32, #tpu.memory_space<vmem>>, vector<8x128xf32>
    %c40 = arith.constant 40 : index
    %c128_30 = arith.constant 128 : index
    %72 = vector.load %arg10[%c40, %c128_30] : memref<64x256xf32, #tpu.memory_space<vmem>>, vector<8x128xf32>
    %73 = vector.extract_strided_slice %70 {offsets = [0, 0], sizes = [8, 128], strides = [1, 1]} : vector<16x256xf32> to vector<8x128xf32>
    %74 = arith.addf %73, %71 : vector<8x128xf32>
    %75 = vector.extract_strided_slice %70 {offsets = [8, 128], sizes = [8, 128], strides = [1, 1]} : vector<16x256xf32> to vector<8x128xf32>
    %76 = arith.addf %75, %72 : vector<8x128xf32>
    %77 = tpu.concatenate %74, %76 in 0 : vector<8x128xf32>, vector<8x128xf32> -> vector<16x128xf32>
    %78 = math.tanh %77 : vector<16x128xf32>
    %79 = arith.mulf %78, %8 : vector<16x128xf32>
    %80 = arith.addf %79, %11 : vector<16x128xf32>
    %81 = vector.extract_strided_slice %80 {offsets = [0, 32], sizes = [16, 32], strides = [1, 1]} : vector<16x128xf32> to vector<16x32xf32>
    %82 = arith.mulf %81, %62 : vector<16x32xf32>
    %83 = vector.extract_strided_slice %80 {offsets = [0, 0], sizes = [16, 32], strides = [1, 1]} : vector<16x128xf32> to vector<16x32xf32>
    %84 = vector.extract_strided_slice %80 {offsets = [0, 64], sizes = [16, 32], strides = [1, 1]} : vector<16x128xf32> to vector<16x32xf32>
    %85 = arith.mulf %83, %84 : vector<16x32xf32>
    %86 = arith.addf %82, %85 : vector<16x32xf32>
    %87 = vector.extract_strided_slice %80 {offsets = [0, 96], sizes = [16, 32], strides = [1, 1]} : vector<16x128xf32> to vector<16x32xf32>
    %88 = math.tanh %86 : vector<16x32xf32>
    %89 = arith.mulf %87, %88 : vector<16x32xf32>
    %90 = vector.extract_strided_slice %89 {offsets = [0, 0], sizes = [8, 32], strides = [1, 1]} : vector<16x32xf32> to vector<8x32xf32>
    %c16_31 = arith.constant 16 : index
    %c0_32 = arith.constant 0 : index
    %91 = vector.load %arg11[%c16_31, %c0_32] : memref<64x64xf32, #tpu.memory_space<vmem>>, vector<8x32xf32>
    tpu.vector_store %arg11[%c16_31, %c0_32], %90 {strides = array<i32>} : memref<64x64xf32, #tpu.memory_space<vmem>>, vector<8x32xf32>,
    %92 = vector.extract_strided_slice %89 {offsets = [8, 0], sizes = [8, 32], strides = [1, 1]} : vector<16x32xf32> to vector<8x32xf32>
    %c40_33 = arith.constant 40 : index
    %c32_34 = arith.constant 32 : index
    %93 = vector.load %arg11[%c40_33, %c32_34] : memref<64x64xf32, #tpu.memory_space<vmem>>, vector<8x32xf32>
    tpu.vector_store %arg11[%c40_33, %c32_34], %92 {strides = array<i32>} : memref<64x64xf32, #tpu.memory_space<vmem>>, vector<8x32xf32>,
    %cst_35 = arith.constant dense<0.000000e+00> : vector<16x256xf32>
    %94 = tpu.matmul %89, %19, %cst_35 {dimension_numbers = #tpu.dot_dimension_numbers<[1], [0], [0], [1], [0, 0, 1, 1], [], []>} : vector<16x32xf32>, vector<32x256xf32>, vector<16x256xf32> -> vector<16x256xf32>
    %c24 = arith.constant 24 : index
    %c0_36 = arith.constant 0 : index
    %95 = vector.load %arg10[%c24, %c0_36] : memref<64x256xf32, #tpu.memory_space<vmem>>, vector<8x128xf32>
    %c32_37 = arith.constant 32 : index
    %c128_38 = arith.constant 128 : index
    %96 = vector.load %arg10[%c32_37, %c128_38] : memref<64x256xf32, #tpu.memory_space<vmem>>, vector<8x128xf32>
    %97 = vector.extract_strided_slice %94 {offsets = [0, 0], sizes = [8, 128], strides = [1, 1]} : vector<16x256xf32> to vector<8x128xf32>
    %98 = arith.addf %97, %95 : vector<8x128xf32>
    %99 = vector.extract_strided_slice %94 {offsets = [8, 128], sizes = [8, 128], strides = [1, 1]} : vector<16x256xf32> to vector<8x128xf32>
    %100 = arith.addf %99, %96 : vector<8x128xf32>
    %101 = tpu.concatenate %98, %100 in 0 : vector<8x128xf32>, vector<8x128xf32> -> vector<16x128xf32>
    %102 = math.tanh %101 : vector<16x128xf32>
    %103 = arith.mulf %102, %8 : vector<16x128xf32>
    %104 = arith.addf %103, %11 : vector<16x128xf32>
    %105 = vector.extract_strided_slice %104 {offsets = [0, 32], sizes = [16, 32], strides = [1, 1]} : vector<16x128xf32> to vector<16x32xf32>
    %106 = arith.mulf %105, %86 : vector<16x32xf32>
    %107 = vector.extract_strided_slice %104 {offsets = [0, 0], sizes = [16, 32], strides = [1, 1]} : vector<16x128xf32> to vector<16x32xf32>
    %108 = vector.extract_strided_slice %104 {offsets = [0, 64], sizes = [16, 32], strides = [1, 1]} : vector<16x128xf32> to vector<16x32xf32>
    %109 = arith.mulf %107, %108 : vector<16x32xf32>
    %110 = arith.addf %106, %109 : vector<16x32xf32>
    %111 = vector.extract_strided_slice %104 {offsets = [0, 96], sizes = [16, 32], strides = [1, 1]} : vector<16x128xf32> to vector<16x32xf32>
    %112 = math.tanh %110 : vector<16x32xf32>
    %113 = arith.mulf %111, %112 : vector<16x32xf32>
    %114 = vector.extract_strided_slice %113 {offsets = [0, 0], sizes = [8, 32], strides = [1, 1]} : vector<16x32xf32> to vector<8x32xf32>
    %c24_39 = arith.constant 24 : index
    %c0_40 = arith.constant 0 : index
    %115 = vector.load %arg11[%c24_39, %c0_40] : memref<64x64xf32, #tpu.memory_space<vmem>>, vector<8x32xf32>
    tpu.vector_store %arg11[%c24_39, %c0_40], %114 {strides = array<i32>} : memref<64x64xf32, #tpu.memory_space<vmem>>, vector<8x32xf32>,
    %116 = vector.extract_strided_slice %113 {offsets = [8, 0], sizes = [8, 32], strides = [1, 1]} : vector<16x32xf32> to vector<8x32xf32>
    %c32_41 = arith.constant 32 : index
    %c32_42 = arith.constant 32 : index
    %117 = vector.load %arg11[%c32_41, %c32_42] : memref<64x64xf32, #tpu.memory_space<vmem>>, vector<8x32xf32>
    tpu.vector_store %arg11[%c32_41, %c32_42], %116 {strides = array<i32>} : memref<64x64xf32, #tpu.memory_space<vmem>>, vector<8x32xf32>,
    %cst_43 = arith.constant dense<0.000000e+00> : vector<16x256xf32>
    %118 = tpu.matmul %113, %19, %cst_43 {dimension_numbers = #tpu.dot_dimension_numbers<[1], [0], [0], [1], [0, 0, 1, 1], [], []>} : vector<16x32xf32>, vector<32x256xf32>, vector<16x256xf32> -> vector<16x256xf32>
    %c32_44 = arith.constant 32 : index
    %c0_45 = arith.constant 0 : index
    %119 = vector.load %arg10[%c32_44, %c0_45] : memref<64x256xf32, #tpu.memory_space<vmem>>, vector<8x128xf32>
    %c24_46 = arith.constant 24 : index
    %c128_47 = arith.constant 128 : index
    %120 = vector.load %arg10[%c24_46, %c128_47] : memref<64x256xf32, #tpu.memory_space<vmem>>, vector<8x128xf32>
    %121 = vector.extract_strided_slice %118 {offsets = [0, 0], sizes = [8, 128], strides = [1, 1]} : vector<16x256xf32> to vector<8x128xf32>
    %122 = arith.addf %121, %119 : vector<8x128xf32>
    %123 = vector.extract_strided_slice %118 {offsets = [8, 128], sizes = [8, 128], strides = [1, 1]} : vector<16x256xf32> to vector<8x128xf32>
    %124 = arith.addf %123, %120 : vector<8x128xf32>
    %125 = tpu.concatenate %122, %124 in 0 : vector<8x128xf32>, vector<8x128xf32> -> vector<16x128xf32>
    %126 = math.tanh %125 : vector<16x128xf32>
    %127 = arith.mulf %126, %8 : vector<16x128xf32>
    %128 = arith.addf %127, %11 : vector<16x128xf32>
    %129 = vector.extract_strided_slice %128 {offsets = [0, 32], sizes = [16, 32], strides = [1, 1]} : vector<16x128xf32> to vector<16x32xf32>
    %130 = arith.mulf %129, %110 : vector<16x32xf32>
    %131 = vector.extract_strided_slice %128 {offsets = [0, 0], sizes = [16, 32], strides = [1, 1]} : vector<16x128xf32> to vector<16x32xf32>
    %132 = vector.extract_strided_slice %128 {offsets = [0, 64], sizes = [16, 32], strides = [1, 1]} : vector<16x128xf32> to vector<16x32xf32>
    %133 = arith.mulf %131, %132 : vector<16x32xf32>
    %134 = arith.addf %130, %133 : vector<16x32xf32>
    %135 = vector.extract_strided_slice %128 {offsets = [0, 96], sizes = [16, 32], strides = [1, 1]} : vector<16x128xf32> to vector<16x32xf32>
    %136 = math.tanh %134 : vector<16x32xf32>
    %137 = arith.mulf %135, %136 : vector<16x32xf32>
    %138 = vector.extract_strided_slice %137 {offsets = [0, 0], sizes = [8, 32], strides = [1, 1]} : vector<16x32xf32> to vector<8x32xf32>
    %c32_48 = arith.constant 32 : index
    %c0_49 = arith.constant 0 : index
    %139 = vector.load %arg11[%c32_48, %c0_49] : memref<64x64xf32, #tpu.memory_space<vmem>>, vector<8x32xf32>
    tpu.vector_store %arg11[%c32_48, %c0_49], %138 {strides = array<i32>} : memref<64x64xf32, #tpu.memory_space<vmem>>, vector<8x32xf32>,
    %140 = vector.extract_strided_slice %137 {offsets = [8, 0], sizes = [8, 32], strides = [1, 1]} : vector<16x32xf32> to vector<8x32xf32>
    %c24_50 = arith.constant 24 : index
    %c32_51 = arith.constant 32 : index
    %141 = vector.load %arg11[%c24_50, %c32_51] : memref<64x64xf32, #tpu.memory_space<vmem>>, vector<8x32xf32>
    tpu.vector_store %arg11[%c24_50, %c32_51], %140 {strides = array<i32>} : memref<64x64xf32, #tpu.memory_space<vmem>>, vector<8x32xf32>,
    %cst_52 = arith.constant dense<0.000000e+00> : vector<16x256xf32>
    %142 = tpu.matmul %137, %19, %cst_52 {dimension_numbers = #tpu.dot_dimension_numbers<[1], [0], [0], [1], [0, 0, 1, 1], [], []>} : vector<16x32xf32>, vector<32x256xf32>, vector<16x256xf32> -> vector<16x256xf32>
    %c40_53 = arith.constant 40 : index
    %c0_54 = arith.constant 0 : index
    %143 = vector.load %arg10[%c40_53, %c0_54] : memref<64x256xf32, #tpu.memory_space<vmem>>, vector<8x128xf32>
    %c16_55 = arith.constant 16 : index
    %c128_56 = arith.constant 128 : index
    %144 = vector.load %arg10[%c16_55, %c128_56] : memref<64x256xf32, #tpu.memory_space<vmem>>, vector<8x128xf32>
    %145 = vector.extract_strided_slice %142 {offsets = [0, 0], sizes = [8, 128], strides = [1, 1]} : vector<16x256xf32> to vector<8x128xf32>
    %146 = arith.addf %145, %143 : vector<8x128xf32>
    %147 = vector.extract_strided_slice %142 {offsets = [8, 128], sizes = [8, 128], strides = [1, 1]} : vector<16x256xf32> to vector<8x128xf32>
    %148 = arith.addf %147, %144 : vector<8x128xf32>
    %149 = tpu.concatenate %146, %148 in 0 : vector<8x128xf32>, vector<8x128xf32> -> vector<16x128xf32>
    %150 = math.tanh %149 : vector<16x128xf32>
    %151 = arith.mulf %150, %8 : vector<16x128xf32>
    %152 = arith.addf %151, %11 : vector<16x128xf32>
    %153 = vector.extract_strided_slice %152 {offsets = [0, 32], sizes = [16, 32], strides = [1, 1]} : vector<16x128xf32> to vector<16x32xf32>
    %154 = arith.mulf %153, %134 : vector<16x32xf32>
    %155 = vector.extract_strided_slice %152 {offsets = [0, 0], sizes = [16, 32], strides = [1, 1]} : vector<16x128xf32> to vector<16x32xf32>
    %156 = vector.extract_strided_slice %152 {offsets = [0, 64], sizes = [16, 32], strides = [1, 1]} : vector<16x128xf32> to vector<16x32xf32>
    %157 = arith.mulf %155, %156 : vector<16x32xf32>
    %158 = arith.addf %154, %157 : vector<16x32xf32>
    %159 = vector.extract_strided_slice %152 {offsets = [0, 96], sizes = [16, 32], strides = [1, 1]} : vector<16x128xf32> to vector<16x32xf32>
    %160 = math.tanh %158 : vector<16x32xf32>
    %161 = arith.mulf %159, %160 : vector<16x32xf32>
    %162 = vector.extract_strided_slice %161 {offsets = [0, 0], sizes = [8, 32], strides = [1, 1]} : vector<16x32xf32> to vector<8x32xf32>
    %c40_57 = arith.constant 40 : index
    %c0_58 = arith.constant 0 : index
    %163 = vector.load %arg11[%c40_57, %c0_58] : memref<64x64xf32, #tpu.memory_space<vmem>>, vector<8x32xf32>
    tpu.vector_store %arg11[%c40_57, %c0_58], %162 {strides = array<i32>} : memref<64x64xf32, #tpu.memory_space<vmem>>, vector<8x32xf32>,
    %164 = vector.extract_strided_slice %161 {offsets = [8, 0], sizes = [8, 32], strides = [1, 1]} : vector<16x32xf32> to vector<8x32xf32>
    %c16_59 = arith.constant 16 : index
    %c32_60 = arith.constant 32 : index
    %165 = vector.load %arg11[%c16_59, %c32_60] : memref<64x64xf32, #tpu.memory_space<vmem>>, vector<8x32xf32>
    tpu.vector_store %arg11[%c16_59, %c32_60], %164 {strides = array<i32>} : memref<64x64xf32, #tpu.memory_space<vmem>>, vector<8x32xf32>,
    %cst_61 = arith.constant dense<0.000000e+00> : vector<16x256xf32>
    %166 = tpu.matmul %161, %19, %cst_61 {dimension_numbers = #tpu.dot_dimension_numbers<[1], [0], [0], [1], [0, 0, 1, 1], [], []>} : vector<16x32xf32>, vector<32x256xf32>, vector<16x256xf32> -> vector<16x256xf32>
    %c48_62 = arith.constant 48 : index
    %c0_63 = arith.constant 0 : index
    %167 = vector.load %arg10[%c48_62, %c0_63] : memref<64x256xf32, #tpu.memory_space<vmem>>, vector<8x128xf32>
    %c8_64 = arith.constant 8 : index
    %c128_65 = arith.constant 128 : index
    %168 = vector.load %arg10[%c8_64, %c128_65] : memref<64x256xf32, #tpu.memory_space<vmem>>, vector<8x128xf32>
    %169 = vector.extract_strided_slice %166 {offsets = [0, 0], sizes = [8, 128], strides = [1, 1]} : vector<16x256xf32> to vector<8x128xf32>
    %170 = arith.addf %169, %167 : vector<8x128xf32>
    %171 = vector.extract_strided_slice %166 {offsets = [8, 128], sizes = [8, 128], strides = [1, 1]} : vector<16x256xf32> to vector<8x128xf32>
    %172 = arith.addf %171, %168 : vector<8x128xf32>
    %173 = tpu.concatenate %170, %172 in 0 : vector<8x128xf32>, vector<8x128xf32> -> vector<16x128xf32>
    %174 = math.tanh %173 : vector<16x128xf32>
    %175 = arith.mulf %174, %8 : vector<16x128xf32>
    %176 = arith.addf %175, %11 : vector<16x128xf32>
    %177 = vector.extract_strided_slice %176 {offsets = [0, 32], sizes = [16, 32], strides = [1, 1]} : vector<16x128xf32> to vector<16x32xf32>
    %178 = arith.mulf %177, %158 : vector<16x32xf32>
    %179 = vector.extract_strided_slice %176 {offsets = [0, 0], sizes = [16, 32], strides = [1, 1]} : vector<16x128xf32> to vector<16x32xf32>
    %180 = vector.extract_strided_slice %176 {offsets = [0, 64], sizes = [16, 32], strides = [1, 1]} : vector<16x128xf32> to vector<16x32xf32>
    %181 = arith.mulf %179, %180 : vector<16x32xf32>
    %182 = arith.addf %178, %181 : vector<16x32xf32>
    %183 = vector.extract_strided_slice %176 {offsets = [0, 96], sizes = [16, 32], strides = [1, 1]} : vector<16x128xf32> to vector<16x32xf32>
    %184 = math.tanh %182 : vector<16x32xf32>
    %185 = arith.mulf %183, %184 : vector<16x32xf32>
    %186 = vector.extract_strided_slice %185 {offsets = [0, 0], sizes = [8, 32], strides = [1, 1]} : vector<16x32xf32> to vector<8x32xf32>
    %c48_66 = arith.constant 48 : index
    %c0_67 = arith.constant 0 : index
    %187 = vector.load %arg11[%c48_66, %c0_67] : memref<64x64xf32, #tpu.memory_space<vmem>>, vector<8x32xf32>
    tpu.vector_store %arg11[%c48_66, %c0_67], %186 {strides = array<i32>} : memref<64x64xf32, #tpu.memory_space<vmem>>, vector<8x32xf32>,
    %188 = vector.extract_strided_slice %185 {offsets = [8, 0], sizes = [8, 32], strides = [1, 1]} : vector<16x32xf32> to vector<8x32xf32>
    %c8_68 = arith.constant 8 : index
    %c32_69 = arith.constant 32 : index
    %189 = vector.load %arg11[%c8_68, %c32_69] : memref<64x64xf32, #tpu.memory_space<vmem>>, vector<8x32xf32>
    tpu.vector_store %arg11[%c8_68, %c32_69], %188 {strides = array<i32>} : memref<64x64xf32, #tpu.memory_space<vmem>>, vector<8x32xf32>,
    %cst_70 = arith.constant dense<0.000000e+00> : vector<16x256xf32>
    %190 = tpu.matmul %185, %19, %cst_70 {dimension_numbers = #tpu.dot_dimension_numbers<[1], [0], [0], [1], [0, 0, 1, 1], [], []>} : vector<16x32xf32>, vector<32x256xf32>, vector<16x256xf32> -> vector<16x256xf32>
    %c56_71 = arith.constant 56 : index
    %c0_72 = arith.constant 0 : index
    %191 = vector.load %arg10[%c56_71, %c0_72] : memref<64x256xf32, #tpu.memory_space<vmem>>, vector<8x128xf32>
    %c0_73 = arith.constant 0 : index
    %c128_74 = arith.constant 128 : index
    %192 = vector.load %arg10[%c0_73, %c128_74] : memref<64x256xf32, #tpu.memory_space<vmem>>, vector<8x128xf32>
    %193 = vector.extract_strided_slice %190 {offsets = [0, 0], sizes = [8, 128], strides = [1, 1]} : vector<16x256xf32> to vector<8x128xf32>
    %194 = arith.addf %193, %191 : vector<8x128xf32>
    %195 = vector.extract_strided_slice %190 {offsets = [8, 128], sizes = [8, 128], strides = [1, 1]} : vector<16x256xf32> to vector<8x128xf32>
    %196 = arith.addf %195, %192 : vector<8x128xf32>
    %197 = tpu.concatenate %194, %196 in 0 : vector<8x128xf32>, vector<8x128xf32> -> vector<16x128xf32>
    %198 = math.tanh %197 : vector<16x128xf32>
    %199 = arith.mulf %198, %8 : vector<16x128xf32>
    %200 = arith.addf %199, %11 : vector<16x128xf32>
    %201 = vector.extract_strided_slice %200 {offsets = [0, 32], sizes = [16, 32], strides = [1, 1]} : vector<16x128xf32> to vector<16x32xf32>
    %202 = arith.mulf %201, %182 : vector<16x32xf32>
    %203 = vector.extract_strided_slice %200 {offsets = [0, 0], sizes = [16, 32], strides = [1, 1]} : vector<16x128xf32> to vector<16x32xf32>
    %204 = vector.extract_strided_slice %200 {offsets = [0, 64], sizes = [16, 32], strides = [1, 1]} : vector<16x128xf32> to vector<16x32xf32>
    %205 = arith.mulf %203, %204 : vector<16x32xf32>
    %206 = arith.addf %202, %205 : vector<16x32xf32>
    %207 = vector.extract_strided_slice %200 {offsets = [0, 96], sizes = [16, 32], strides = [1, 1]} : vector<16x128xf32> to vector<16x32xf32>
    %208 = math.tanh %206 : vector<16x32xf32>
    %209 = arith.mulf %207, %208 : vector<16x32xf32>
    %210 = vector.extract_strided_slice %209 {offsets = [0, 0], sizes = [8, 32], strides = [1, 1]} : vector<16x32xf32> to vector<8x32xf32>
    %c56_75 = arith.constant 56 : index
    %c0_76 = arith.constant 0 : index
    %211 = vector.load %arg11[%c56_75, %c0_76] : memref<64x64xf32, #tpu.memory_space<vmem>>, vector<8x32xf32>
    tpu.vector_store %arg11[%c56_75, %c0_76], %210 {strides = array<i32>} : memref<64x64xf32, #tpu.memory_space<vmem>>, vector<8x32xf32>,
    %212 = vector.extract_strided_slice %209 {offsets = [8, 0], sizes = [8, 32], strides = [1, 1]} : vector<16x32xf32> to vector<8x32xf32>
    %c0_77 = arith.constant 0 : index
    %c32_78 = arith.constant 32 : index
    %213 = vector.load %arg11[%c0_77, %c32_78] : memref<64x64xf32, #tpu.memory_space<vmem>>, vector<8x32xf32>
    tpu.vector_store %arg11[%c0_77, %c32_78], %212 {strides = array<i32>} : memref<64x64xf32, #tpu.memory_space<vmem>>, vector<8x32xf32>,
    %c0_79 = arith.constant 0 : index
    %c0_80 = arith.constant 0 : index
    %214 = vector.load %arg11[%c0_79, %c0_80] : memref<64x64xf32, #tpu.memory_space<vmem>>, vector<64x64xf32>
    %c0_81 = arith.constant 0 : index
    %c0_82 = arith.constant 0 : index
    %215 = vector.load %arg4[%c0_81, %c0_82] : memref<64x256xf32, #tpu.memory_space<vmem>>, vector<64x256xf32>
    %cst_83 = arith.constant dense<0.000000e+00> : vector<64x256xf32>
    %216 = tpu.matmul %214, %215, %cst_83 {dimension_numbers = #tpu.dot_dimension_numbers<[1], [0], [0], [1], [0, 0, 1, 1], [], []>} : vector<64x64xf32>, vector<64x256xf32>, vector<64x256xf32> -> vector<64x256xf32>
    %c0_84 = arith.constant 0 : index
    %c0_85 = arith.constant 0 : index
    %217 = vector.load %arg6[%c0_84, %c0_85] : memref<1x256xf32, #tpu.memory_space<vmem>>, vector<1x256xf32>
    %218 = vector.broadcast %217 : vector<1x256xf32> to vector<64x256xf32>
    %219 = arith.addf %216, %218 : vector<64x256xf32>
    %c0_86 = arith.constant 0 : index
    %c0_87 = arith.constant 0 : index
    %220 = vector.load %arg10[%c0_86, %c0_87] : memref<64x256xf32, #tpu.memory_space<vmem>>, vector<64x256xf32>
    tpu.vector_store %arg10[%c0_86, %c0_87], %219 {strides = array<i32>} : memref<64x256xf32, #tpu.memory_space<vmem>>, vector<64x256xf32>,
    %c0_88 = arith.constant 0 : index
    %c0_89 = arith.constant 0 : index
    %221 = vector.load %arg5[%c0_88, %c0_89] : memref<32x256xf32, #tpu.memory_space<vmem>>, vector<32x256xf32>
    %cst_90 = arith.constant 0.000000e+00 : f32
    %222 = vector.broadcast %cst_90 : f32 to vector<16x32xf32>
    %cst_91 = arith.constant 0.000000e+00 : f32
    %223 = vector.broadcast %cst_91 : f32 to vector<16x32xf32>
    %cst_92 = arith.constant dense<0.000000e+00> : vector<16x256xf32>
    %224 = tpu.matmul %222, %221, %cst_92 {dimension_numbers = #tpu.dot_dimension_numbers<[1], [0], [0], [1], [0, 0, 1, 1], [], []>} : vector<16x32xf32>, vector<32x256xf32>, vector<16x256xf32> -> vector<16x256xf32>
    %c0_93 = arith.constant 0 : index
    %c0_94 = arith.constant 0 : index
    %225 = vector.load %arg10[%c0_93, %c0_94] : memref<64x256xf32, #tpu.memory_space<vmem>>, vector<8x128xf32>
    %c56_95 = arith.constant 56 : index
    %c128_96 = arith.constant 128 : index
    %226 = vector.load %arg10[%c56_95, %c128_96] : memref<64x256xf32, #tpu.memory_space<vmem>>, vector<8x128xf32>
    %227 = vector.extract_strided_slice %224 {offsets = [0, 0], sizes = [8, 128], strides = [1, 1]} : vector<16x256xf32> to vector<8x128xf32>
    %228 = arith.addf %227, %225 : vector<8x128xf32>
    %229 = vector.extract_strided_slice %224 {offsets = [8, 128], sizes = [8, 128], strides = [1, 1]} : vector<16x256xf32> to vector<8x128xf32>
    %230 = arith.addf %229, %226 : vector<8x128xf32>
    %231 = tpu.concatenate %228, %230 in 0 : vector<8x128xf32>, vector<8x128xf32> -> vector<16x128xf32>
    %232 = math.tanh %231 : vector<16x128xf32>
    %233 = arith.mulf %232, %8 : vector<16x128xf32>
    %234 = arith.addf %233, %11 : vector<16x128xf32>
    %235 = vector.extract_strided_slice %234 {offsets = [0, 32], sizes = [16, 32], strides = [1, 1]} : vector<16x128xf32> to vector<16x32xf32>
    %236 = arith.mulf %235, %223 : vector<16x32xf32>
    %237 = vector.extract_strided_slice %234 {offsets = [0, 0], sizes = [16, 32], strides = [1, 1]} : vector<16x128xf32> to vector<16x32xf32>
    %238 = vector.extract_strided_slice %234 {offsets = [0, 64], sizes = [16, 32], strides = [1, 1]} : vector<16x128xf32> to vector<16x32xf32>
    %239 = arith.mulf %237, %238 : vector<16x32xf32>
    %240 = arith.addf %236, %239 : vector<16x32xf32>
    %241 = vector.extract_strided_slice %234 {offsets = [0, 96], sizes = [16, 32], strides = [1, 1]} : vector<16x128xf32> to vector<16x32xf32>
    %242 = math.tanh %240 : vector<16x32xf32>
    %243 = arith.mulf %241, %242 : vector<16x32xf32>
    %244 = vector.extract_strided_slice %243 {offsets = [8, 0], sizes = [8, 32], strides = [1, 1]} : vector<16x32xf32> to vector<8x32xf32>
    %cst_97 = arith.constant dense<0.000000e+00> : vector<16x256xf32>
    %245 = tpu.matmul %243, %221, %cst_97 {dimension_numbers = #tpu.dot_dimension_numbers<[1], [0], [0], [1], [0, 0, 1, 1], [], []>} : vector<16x32xf32>, vector<32x256xf32>, vector<16x256xf32> -> vector<16x256xf32>
    %c8_98 = arith.constant 8 : index
    %c0_99 = arith.constant 0 : index
    %246 = vector.load %arg10[%c8_98, %c0_99] : memref<64x256xf32, #tpu.memory_space<vmem>>, vector<8x128xf32>
    %c48_100 = arith.constant 48 : index
    %c128_101 = arith.constant 128 : index
    %247 = vector.load %arg10[%c48_100, %c128_101] : memref<64x256xf32, #tpu.memory_space<vmem>>, vector<8x128xf32>
    %248 = vector.extract_strided_slice %245 {offsets = [0, 0], sizes = [8, 128], strides = [1, 1]} : vector<16x256xf32> to vector<8x128xf32>
    %249 = arith.addf %248, %246 : vector<8x128xf32>
    %250 = vector.extract_strided_slice %245 {offsets = [8, 128], sizes = [8, 128], strides = [1, 1]} : vector<16x256xf32> to vector<8x128xf32>
    %251 = arith.addf %250, %247 : vector<8x128xf32>
    %252 = tpu.concatenate %249, %251 in 0 : vector<8x128xf32>, vector<8x128xf32> -> vector<16x128xf32>
    %253 = math.tanh %252 : vector<16x128xf32>
    %254 = arith.mulf %253, %8 : vector<16x128xf32>
    %255 = arith.addf %254, %11 : vector<16x128xf32>
    %256 = vector.extract_strided_slice %255 {offsets = [0, 32], sizes = [16, 32], strides = [1, 1]} : vector<16x128xf32> to vector<16x32xf32>
    %257 = arith.mulf %256, %240 : vector<16x32xf32>
    %258 = vector.extract_strided_slice %255 {offsets = [0, 0], sizes = [16, 32], strides = [1, 1]} : vector<16x128xf32> to vector<16x32xf32>
    %259 = vector.extract_strided_slice %255 {offsets = [0, 64], sizes = [16, 32], strides = [1, 1]} : vector<16x128xf32> to vector<16x32xf32>
    %260 = arith.mulf %258, %259 : vector<16x32xf32>
    %261 = arith.addf %257, %260 : vector<16x32xf32>
    %262 = vector.extract_strided_slice %255 {offsets = [0, 96], sizes = [16, 32], strides = [1, 1]} : vector<16x128xf32> to vector<16x32xf32>
    %263 = math.tanh %261 : vector<16x32xf32>
    %264 = arith.mulf %262, %263 : vector<16x32xf32>
    %cst_102 = arith.constant dense<0.000000e+00> : vector<16x256xf32>
    %265 = tpu.matmul %264, %221, %cst_102 {dimension_numbers = #tpu.dot_dimension_numbers<[1], [0], [0], [1], [0, 0, 1, 1], [], []>} : vector<16x32xf32>, vector<32x256xf32>, vector<16x256xf32> -> vector<16x256xf32>
    %c16_103 = arith.constant 16 : index
    %c0_104 = arith.constant 0 : index
    %266 = vector.load %arg10[%c16_103, %c0_104] : memref<64x256xf32, #tpu.memory_space<vmem>>, vector<8x128xf32>
    %c40_105 = arith.constant 40 : index
    %c128_106 = arith.constant 128 : index
    %267 = vector.load %arg10[%c40_105, %c128_106] : memref<64x256xf32, #tpu.memory_space<vmem>>, vector<8x128xf32>
    %268 = vector.extract_strided_slice %265 {offsets = [0, 0], sizes = [8, 128], strides = [1, 1]} : vector<16x256xf32> to vector<8x128xf32>
    %269 = arith.addf %268, %266 : vector<8x128xf32>
    %270 = vector.extract_strided_slice %265 {offsets = [8, 128], sizes = [8, 128], strides = [1, 1]} : vector<16x256xf32> to vector<8x128xf32>
    %271 = arith.addf %270, %267 : vector<8x128xf32>
    %272 = tpu.concatenate %269, %271 in 0 : vector<8x128xf32>, vector<8x128xf32> -> vector<16x128xf32>
    %273 = math.tanh %272 : vector<16x128xf32>
    %274 = arith.mulf %273, %8 : vector<16x128xf32>
    %275 = arith.addf %274, %11 : vector<16x128xf32>
    %276 = vector.extract_strided_slice %275 {offsets = [0, 32], sizes = [16, 32], strides = [1, 1]} : vector<16x128xf32> to vector<16x32xf32>
    %277 = arith.mulf %276, %261 : vector<16x32xf32>
    %278 = vector.extract_strided_slice %275 {offsets = [0, 0], sizes = [16, 32], strides = [1, 1]} : vector<16x128xf32> to vector<16x32xf32>
    %279 = vector.extract_strided_slice %275 {offsets = [0, 64], sizes = [16, 32], strides = [1, 1]} : vector<16x128xf32> to vector<16x32xf32>
    %280 = arith.mulf %278, %279 : vector<16x32xf32>
    %281 = arith.addf %277, %280 : vector<16x32xf32>
    %282 = vector.extract_strided_slice %275 {offsets = [0, 96], sizes = [16, 32], strides = [1, 1]} : vector<16x128xf32> to vector<16x32xf32>
    %283 = math.tanh %281 : vector<16x32xf32>
    %284 = arith.mulf %282, %283 : vector<16x32xf32>
    %cst_107 = arith.constant dense<0.000000e+00> : vector<16x256xf32>
    %285 = tpu.matmul %284, %221, %cst_107 {dimension_numbers = #tpu.dot_dimension_numbers<[1], [0], [0], [1], [0, 0, 1, 1], [], []>} : vector<16x32xf32>, vector<32x256xf32>, vector<16x256xf32> -> vector<16x256xf32>
    %c24_108 = arith.constant 24 : index
    %c0_109 = arith.constant 0 : index
    %286 = vector.load %arg10[%c24_108, %c0_109] : memref<64x256xf32, #tpu.memory_space<vmem>>, vector<8x128xf32>
    %c32_110 = arith.constant 32 : index
    %c128_111 = arith.constant 128 : index
    %287 = vector.load %arg10[%c32_110, %c128_111] : memref<64x256xf32, #tpu.memory_space<vmem>>, vector<8x128xf32>
    %288 = vector.extract_strided_slice %285 {offsets = [0, 0], sizes = [8, 128], strides = [1, 1]} : vector<16x256xf32> to vector<8x128xf32>
    %289 = arith.addf %288, %286 : vector<8x128xf32>
    %290 = vector.extract_strided_slice %285 {offsets = [8, 128], sizes = [8, 128], strides = [1, 1]} : vector<16x256xf32> to vector<8x128xf32>
    %291 = arith.addf %290, %287 : vector<8x128xf32>
    %292 = tpu.concatenate %289, %291 in 0 : vector<8x128xf32>, vector<8x128xf32> -> vector<16x128xf32>
    %293 = math.tanh %292 : vector<16x128xf32>
    %294 = arith.mulf %293, %8 : vector<16x128xf32>
    %295 = arith.addf %294, %11 : vector<16x128xf32>
    %296 = vector.extract_strided_slice %295 {offsets = [0, 32], sizes = [16, 32], strides = [1, 1]} : vector<16x128xf32> to vector<16x32xf32>
    %297 = arith.mulf %296, %281 : vector<16x32xf32>
    %298 = vector.extract_strided_slice %295 {offsets = [0, 0], sizes = [16, 32], strides = [1, 1]} : vector<16x128xf32> to vector<16x32xf32>
    %299 = vector.extract_strided_slice %295 {offsets = [0, 64], sizes = [16, 32], strides = [1, 1]} : vector<16x128xf32> to vector<16x32xf32>
    %300 = arith.mulf %298, %299 : vector<16x32xf32>
    %301 = arith.addf %297, %300 : vector<16x32xf32>
    %302 = vector.extract_strided_slice %295 {offsets = [0, 96], sizes = [16, 32], strides = [1, 1]} : vector<16x128xf32> to vector<16x32xf32>
    %303 = math.tanh %301 : vector<16x32xf32>
    %304 = arith.mulf %302, %303 : vector<16x32xf32>
    %cst_112 = arith.constant dense<0.000000e+00> : vector<16x256xf32>
    %305 = tpu.matmul %304, %221, %cst_112 {dimension_numbers = #tpu.dot_dimension_numbers<[1], [0], [0], [1], [0, 0, 1, 1], [], []>} : vector<16x32xf32>, vector<32x256xf32>, vector<16x256xf32> -> vector<16x256xf32>
    %c32_113 = arith.constant 32 : index
    %c0_114 = arith.constant 0 : index
    %306 = vector.load %arg10[%c32_113, %c0_114] : memref<64x256xf32, #tpu.memory_space<vmem>>, vector<8x128xf32>
    %c24_115 = arith.constant 24 : index
    %c128_116 = arith.constant 128 : index
    %307 = vector.load %arg10[%c24_115, %c128_116] : memref<64x256xf32, #tpu.memory_space<vmem>>, vector<8x128xf32>
    %308 = vector.extract_strided_slice %305 {offsets = [0, 0], sizes = [8, 128], strides = [1, 1]} : vector<16x256xf32> to vector<8x128xf32>
    %309 = arith.addf %308, %306 : vector<8x128xf32>
    %310 = vector.extract_strided_slice %305 {offsets = [8, 128], sizes = [8, 128], strides = [1, 1]} : vector<16x256xf32> to vector<8x128xf32>
    %311 = arith.addf %310, %307 : vector<8x128xf32>
    %312 = tpu.concatenate %309, %311 in 0 : vector<8x128xf32>, vector<8x128xf32> -> vector<16x128xf32>
    %313 = math.tanh %312 : vector<16x128xf32>
    %314 = arith.mulf %313, %8 : vector<16x128xf32>
    %315 = arith.addf %314, %11 : vector<16x128xf32>
    %316 = vector.extract_strided_slice %315 {offsets = [0, 32], sizes = [16, 32], strides = [1, 1]} : vector<16x128xf32> to vector<16x32xf32>
    %317 = arith.mulf %316, %301 : vector<16x32xf32>
    %318 = vector.extract_strided_slice %315 {offsets = [0, 0], sizes = [16, 32], strides = [1, 1]} : vector<16x128xf32> to vector<16x32xf32>
    %319 = vector.extract_strided_slice %315 {offsets = [0, 64], sizes = [16, 32], strides = [1, 1]} : vector<16x128xf32> to vector<16x32xf32>
    %320 = arith.mulf %318, %319 : vector<16x32xf32>
    %321 = arith.addf %317, %320 : vector<16x32xf32>
    %322 = vector.extract_strided_slice %315 {offsets = [0, 96], sizes = [16, 32], strides = [1, 1]} : vector<16x128xf32> to vector<16x32xf32>
    %323 = math.tanh %321 : vector<16x32xf32>
    %324 = arith.mulf %322, %323 : vector<16x32xf32>
    %cst_117 = arith.constant dense<0.000000e+00> : vector<16x256xf32>
    %325 = tpu.matmul %324, %221, %cst_117 {dimension_numbers = #tpu.dot_dimension_numbers<[1], [0], [0], [1], [0, 0, 1, 1], [], []>} : vector<16x32xf32>, vector<32x256xf32>, vector<16x256xf32> -> vector<16x256xf32>
    %c40_118 = arith.constant 40 : index
    %c0_119 = arith.constant 0 : index
    %326 = vector.load %arg10[%c40_118, %c0_119] : memref<64x256xf32, #tpu.memory_space<vmem>>, vector<8x128xf32>
    %c16_120 = arith.constant 16 : index
    %c128_121 = arith.constant 128 : index
    %327 = vector.load %arg10[%c16_120, %c128_121] : memref<64x256xf32, #tpu.memory_space<vmem>>, vector<8x128xf32>
    %328 = vector.extract_strided_slice %325 {offsets = [0, 0], sizes = [8, 128], strides = [1, 1]} : vector<16x256xf32> to vector<8x128xf32>
    %329 = arith.addf %328, %326 : vector<8x128xf32>
    %330 = vector.extract_strided_slice %325 {offsets = [8, 128], sizes = [8, 128], strides = [1, 1]} : vector<16x256xf32> to vector<8x128xf32>
    %331 = arith.addf %330, %327 : vector<8x128xf32>
    %332 = tpu.concatenate %329, %331 in 0 : vector<8x128xf32>, vector<8x128xf32> -> vector<16x128xf32>
    %333 = math.tanh %332 : vector<16x128xf32>
    %334 = arith.mulf %333, %8 : vector<16x128xf32>
    %335 = arith.addf %334, %11 : vector<16x128xf32>
    %336 = vector.extract_strided_slice %335 {offsets = [0, 32], sizes = [16, 32], strides = [1, 1]} : vector<16x128xf32> to vector<16x32xf32>
    %337 = arith.mulf %336, %321 : vector<16x32xf32>
    %338 = vector.extract_strided_slice %335 {offsets = [0, 0], sizes = [16, 32], strides = [1, 1]} : vector<16x128xf32> to vector<16x32xf32>
    %339 = vector.extract_strided_slice %335 {offsets = [0, 64], sizes = [16, 32], strides = [1, 1]} : vector<16x128xf32> to vector<16x32xf32>
    %340 = arith.mulf %338, %339 : vector<16x32xf32>
    %341 = arith.addf %337, %340 : vector<16x32xf32>
    %342 = vector.extract_strided_slice %335 {offsets = [0, 96], sizes = [16, 32], strides = [1, 1]} : vector<16x128xf32> to vector<16x32xf32>
    %343 = math.tanh %341 : vector<16x32xf32>
    %344 = arith.mulf %342, %343 : vector<16x32xf32>
    %cst_122 = arith.constant dense<0.000000e+00> : vector<16x256xf32>
    %345 = tpu.matmul %344, %221, %cst_122 {dimension_numbers = #tpu.dot_dimension_numbers<[1], [0], [0], [1], [0, 0, 1, 1], [], []>} : vector<16x32xf32>, vector<32x256xf32>, vector<16x256xf32> -> vector<16x256xf32>
    %c48_123 = arith.constant 48 : index
    %c0_124 = arith.constant 0 : index
    %346 = vector.load %arg10[%c48_123, %c0_124] : memref<64x256xf32, #tpu.memory_space<vmem>>, vector<8x128xf32>
    %c8_125 = arith.constant 8 : index
    %c128_126 = arith.constant 128 : index
    %347 = vector.load %arg10[%c8_125, %c128_126] : memref<64x256xf32, #tpu.memory_space<vmem>>, vector<8x128xf32>
    %348 = vector.extract_strided_slice %345 {offsets = [0, 0], sizes = [8, 128], strides = [1, 1]} : vector<16x256xf32> to vector<8x128xf32>
    %349 = arith.addf %348, %346 : vector<8x128xf32>
    %350 = vector.extract_strided_slice %345 {offsets = [8, 128], sizes = [8, 128], strides = [1, 1]} : vector<16x256xf32> to vector<8x128xf32>
    %351 = arith.addf %350, %347 : vector<8x128xf32>
    %352 = tpu.concatenate %349, %351 in 0 : vector<8x128xf32>, vector<8x128xf32> -> vector<16x128xf32>
    %353 = math.tanh %352 : vector<16x128xf32>
    %354 = arith.mulf %353, %8 : vector<16x128xf32>
    %355 = arith.addf %354, %11 : vector<16x128xf32>
    %356 = vector.extract_strided_slice %355 {offsets = [0, 32], sizes = [16, 32], strides = [1, 1]} : vector<16x128xf32> to vector<16x32xf32>
    %357 = arith.mulf %356, %341 : vector<16x32xf32>
    %358 = vector.extract_strided_slice %355 {offsets = [0, 0], sizes = [16, 32], strides = [1, 1]} : vector<16x128xf32> to vector<16x32xf32>
    %359 = vector.extract_strided_slice %355 {offsets = [0, 64], sizes = [16, 32], strides = [1, 1]} : vector<16x128xf32> to vector<16x32xf32>
    %360 = arith.mulf %358, %359 : vector<16x32xf32>
    %361 = arith.addf %357, %360 : vector<16x32xf32>
    %362 = vector.extract_strided_slice %355 {offsets = [0, 96], sizes = [16, 32], strides = [1, 1]} : vector<16x128xf32> to vector<16x32xf32>
    %363 = math.tanh %361 : vector<16x32xf32>
    %364 = arith.mulf %362, %363 : vector<16x32xf32>
    %cst_127 = arith.constant dense<0.000000e+00> : vector<16x256xf32>
    %365 = tpu.matmul %364, %221, %cst_127 {dimension_numbers = #tpu.dot_dimension_numbers<[1], [0], [0], [1], [0, 0, 1, 1], [], []>} : vector<16x32xf32>, vector<32x256xf32>, vector<16x256xf32> -> vector<16x256xf32>
    %c56_128 = arith.constant 56 : index
    %c0_129 = arith.constant 0 : index
    %366 = vector.load %arg10[%c56_128, %c0_129] : memref<64x256xf32, #tpu.memory_space<vmem>>, vector<8x128xf32>
    %c0_130 = arith.constant 0 : index
    %c128_131 = arith.constant 128 : index
    %367 = vector.load %arg10[%c0_130, %c128_131] : memref<64x256xf32, #tpu.memory_space<vmem>>, vector<8x128xf32>
    %368 = vector.extract_strided_slice %365 {offsets = [0, 0], sizes = [8, 128], strides = [1, 1]} : vector<16x256xf32> to vector<8x128xf32>
    %369 = arith.addf %368, %366 : vector<8x128xf32>
    %370 = vector.extract_strided_slice %365 {offsets = [8, 128], sizes = [8, 128], strides = [1, 1]} : vector<16x256xf32> to vector<8x128xf32>
    %371 = arith.addf %370, %367 : vector<8x128xf32>
    %372 = tpu.concatenate %369, %371 in 0 : vector<8x128xf32>, vector<8x128xf32> -> vector<16x128xf32>
    %373 = math.tanh %372 : vector<16x128xf32>
    %374 = arith.mulf %373, %8 : vector<16x128xf32>
    %375 = arith.addf %374, %11 : vector<16x128xf32>
    %376 = vector.extract_strided_slice %375 {offsets = [0, 32], sizes = [16, 32], strides = [1, 1]} : vector<16x128xf32> to vector<16x32xf32>
    %377 = arith.mulf %376, %361 : vector<16x32xf32>
    %378 = vector.extract_strided_slice %375 {offsets = [0, 0], sizes = [16, 32], strides = [1, 1]} : vector<16x128xf32> to vector<16x32xf32>
    %379 = vector.extract_strided_slice %375 {offsets = [0, 64], sizes = [16, 32], strides = [1, 1]} : vector<16x128xf32> to vector<16x32xf32>
    %380 = arith.mulf %378, %379 : vector<16x32xf32>
    %381 = arith.addf %377, %380 : vector<16x32xf32>
    %382 = vector.extract_strided_slice %375 {offsets = [0, 96], sizes = [16, 32], strides = [1, 1]} : vector<16x128xf32> to vector<16x32xf32>
    %383 = math.tanh %381 : vector<16x32xf32>
    %384 = arith.mulf %382, %383 : vector<16x32xf32>
    %385 = vector.extract_strided_slice %384 {offsets = [0, 0], sizes = [8, 32], strides = [1, 1]} : vector<16x32xf32> to vector<8x32xf32>
    %386 = tpu.concatenate %385, %244 in 1 : vector<8x32xf32>, vector<8x32xf32> -> vector<8x64xf32>
    %c0_132 = arith.constant 0 : index
    %c0_133 = arith.constant 0 : index
    %387 = vector.load %arg7[%c0_132, %c0_133] : memref<64x2xf32, #tpu.memory_space<vmem>>, vector<64x2xf32>
    %cst_134 = arith.constant dense<0.000000e+00> : vector<8x2xf32>
    %388 = tpu.matmul %386, %387, %cst_134 {dimension_numbers = #tpu.dot_dimension_numbers<[1], [0], [0], [1], [0, 0, 1, 1], [], []>} : vector<8x64xf32>, vector<64x2xf32>, vector<8x2xf32> -> vector<8x2xf32>
    %c0_135 = arith.constant 0 : index
    %c0_136 = arith.constant 0 : index
    %389 = vector.load %arg8[%c0_135, %c0_136] : memref<1x2xf32, #tpu.memory_space<vmem>>, vector<1x2xf32>
    %390 = vector.broadcast %389 : vector<1x2xf32> to vector<8x2xf32>
    %391 = arith.addf %388, %390 : vector<8x2xf32>
    %c0_137 = arith.constant 0 : index
    %c0_138 = arith.constant 0 : index
    %392 = vector.load %arg9[%c0_137, %c0_138] : memref<8x2xf32, #tpu.memory_space<vmem>>, vector<8x2xf32>
    tpu.vector_store %arg9[%c0_137, %c0_138], %391 {strides = array<i32>} : memref<8x2xf32, #tpu.memory_space<vmem>>, vector<8x2xf32>,
    return
  }
}

</mosaic_0001>

<bundles_post_ra>
// kernel: eq.1
= control target key start
LH: loop header
LB: loop body
LE: loop exit
PB: predicated region body
PF: predicated region fallthrough
CT: control target
= control target key end

     0   :  { %s67_s10 = smov 56   ;;  %s68_s11 = smov 40   ;;  %vm3_vm0 = vcmask 64512   ;;  %vm9_vm1 = vcmask 523712   ;;  %vm15_vm2 = vcmask 458112   ;;  %vm21_vm3 = vcmask 392512   ;;  %s111_s0 = inlined_call_operand.vmem [shape: s32[8,8], index: 0, kind: input, shape index: {}]   ;;  %s112_s1 = inlined_call_operand.vmem [shape: s32[64], index: 1, kind: output, shape index: {}]  }
   0x1   :  { %v53_v0 = vld [vmem:[%s111_s0 + $0x7] sm:$0x1]   ;;  %v55_v1 = vld [vmem:[%s111_s0 + $0x5] sm:$0x1]   ;;  %v54_v2 = vld [vmem:[%s111_s0 + $0x6] sm:$0x1]  }
   0x2   :  { %7 = vrot.lane.b32.xlu0 %v53_v0, %s67_s10  ;;  %19 = vrot.lane.b32.xlu1 %v55_v1, %s68_s11  ;;  %v56_v3 = vld [vmem:[%s111_s0 + $0x4] sm:$0x1]   ;;  %v2_v4 = vld [vmem:[%s111_s0] sm:$0x1]   ;;  %s69_s18 = smov 48   ;;  %s70_s19 = smov 32  }
   0x3   :  { %4 = vst.msk [vmem:[#allocation0] sm:$0x1] %vm3_vm0, %v2_v4   ;;  %v57_v5 = vld [vmem:[%s111_s0 + $0x3] sm:$0x1]   ;;  %v58_v6 = vld [vmem:[%s111_s0 + $0x2] sm:$0x1]  }
   0x4   :  { %s71_s24 = smov 24   ;;  %s72_s25 = smov 16   ;;  %v59_v7 = vld [vmem:[%s111_s0 + $0x1] sm:$0x1]   ;;  %vm27_vm4 = vcmask 326912   ;;  %vm33_vm5 = vcmask 261312  }
   0x5   :  { %s73_s0 = smov 8   ;;  %vm39_vm6 = vcmask 195712   ;;  %vm45_vm7 = vcmask 130112  }
   0x6   :  { %13 = vrot.lane.b32.xlu0 %v54_v2, %s69_s18  ;;  %25 = vrot.lane.b32.xlu1 %v56_v3, %s70_s19 }
   0xa   :  { %31 = vrot.lane.b32.xlu0 %v57_v5, %s71_s24  ;;  %37 = vrot.lane.b32.xlu1 %v58_v6, %s72_s25 }
   0xe   :  { %43 = vrot.lane.b32.xlu0 %v59_v7, %s73_s0 }
  0x74   :  { %v8_v8 = vpop.permute.xlu0 %7   ;;  %v20_v9 = vpop.permute.xlu1 %19  }
  0x75   :  { %10 = vst.msk [vmem:[#allocation0] sm:$0x1] %vm9_vm1, %v8_v8  }
  0x78   :  { %v14_v10 = vpop.permute.xlu0 %13   ;;  %v26_v11 = vpop.permute.xlu1 %25  }
  0x79   :  { %16 = vst.msk [vmem:[#allocation0] sm:$0x1] %vm15_vm2, %v14_v10  }
  0x7a   :  { %22 = vst.msk [vmem:[#allocation0] sm:$0x1] %vm21_vm3, %v20_v9  }
  0x7b   :  { %28 = vst.msk [vmem:[#allocation0] sm:$0x1] %vm27_vm4, %v26_v11  }
  0x7c   :  { %v32_v12 = vpop.permute.xlu0 %31   ;;  %v38_v13 = vpop.permute.xlu1 %37  }
  0x7d   :  { %34 = vst.msk [vmem:[#allocation0] sm:$0x1] %vm33_vm5, %v32_v12  }
  0x7e   :  { %40 = vst.msk [vmem:[#allocation0] sm:$0x1] %vm39_vm6, %v38_v13  }
  0x80   :  { %v44_v14 = vpop.permute.xlu0 %43  }
  0x81   :  { %46 = vst.msk [vmem:[#allocation0] sm:$0x1] %vm45_vm7, %v44_v14  }
  0x88   :  { %v50_v15 = vld [vmem:[#allocation0] sm:$0x1] }
  0x89   :  { %52 = vst [vmem:[%s112_s1] sm:$0x1] %v50_v15 }

// kernel: ts_birnn_forward.1
= control target key start
LH: loop header
LB: loop body
LE: loop exit
PB: predicated region body
PF: predicated region fallthrough
CT: control target
= control target key end

     0   :  { %14 = vsyncpa [#allocation5], 0  ;;  %s3791_s0 = inlined_call_operand.vmem [shape: f32[64,16], index: 0, kind: input, shape index: {}]   ;;  %s3792_s1 = inlined_call_operand.vmem [shape: f32[16,256], index: 1, kind: input, shape index: {}]   ;;  %s3793_s2 = inlined_call_operand.hbm [shape: f32[32,256], index: 2, kind: input, shape index: {}]   ;;  %s3794_s3 = inlined_call_operand.vmem [shape: f32[1,256], index: 3, kind: input, shape index: {}]   ;;  %s3795_s4 = inlined_call_operand.vmem [shape: f32[64,256], index: 4, kind: input, shape index: {}]   ;;  %s3796_s5 = inlined_call_operand.hbm [shape: f32[32,256], index: 5, kind: input, shape index: {}]   ;;  %s3797_s6 = inlined_call_operand.vmem [shape: f32[1,256], index: 6, kind: input, shape index: {}]   ;;  %s3798_s7 = inlined_call_operand.vmem [shape: f32[64,2], index: 7, kind: input, shape index: {}]   ;;  %s3799_s8 = inlined_call_operand.vmem [shape: f32[1,2], index: 8, kind: input, shape index: {}]   ;;  %s3800_s9 = inlined_call_operand.vmem [shape: f32[8,2], index: 9, kind: output, shape index: {}]  }
   0x1   :  { %15 = vsyncpa [#allocation7], 0  ;;  %s3052_s30 = smov [#allocation4]   ;;  %s3004_s13 = scalar_lea.hbm %s3793_s2, 1024 }
   0x2   :  { %s25_s10 = sshll.u32 %s3052_s30, 4  ;;  %p3005_p0 = scmp.ne.s32.totalorder %s3793_s2, %s3004_s13  ;;  %s26_s10 = int_to_ptr.vmem [resolvable:$true] %s25_s10 }
   0x3   :  { %p3008_p1 = scmp.lt.u32.totalorder %s3004_s13, %s3793_s2 }
   0x5   :  { %p3010_p2 = pnand %p3008_p1, %p3005_p0 }
   0x7   :  { %3013 = shalt.err (!%p3010_p2)
}
   0x8   :  { %s3014_s18 = scalar_lea.vmem %s26_s10, 1024  ;;  %p3019_p4 = scmp.lt.s32.totalorder %s26_s10, %s26_s10 }
   0x9   :  { %p3015_p3 = scmp.ne.s32.totalorder %s26_s10, %s3014_s18  ;;  %p3020_p5 = scmp.lt.s32.totalorder %s3014_s18, %s3014_s18 }
   0xb   :  { %p3021_p6 = por %p3020_p5, %p3019_p4 }
   0xd   :  { %p3022_p7 = pnand %p3021_p6, %p3015_p3 }
   0xf   :  { %3025 = shalt.err (!%p3022_p7)
}
  0x10   :  { %s3053_s19 = smov 256   ;;  %s3054_s20 = smov 16  }
  0x11   :  { %31 = dma.hbm_to_vmem [thread:$0]  %s3793_s2, 1024, %s26_s10, [#allocation5], %s3053_s19, %s3053_s19, %s3054_s20  }
  0x12   :  { %s3055_s23 = smov [#allocation6]   ;;  %s3026_s27 = scalar_lea.hbm %s3796_s5, 1024 }
  0x13   :  { %s41_s24 = sshll.u32 %s3055_s23, 4  ;;  %p3027_p8 = scmp.ne.s32.totalorder %s3796_s5, %s3026_s27  ;;  %s42_s24 = int_to_ptr.vmem [resolvable:$true] %s41_s24 }
  0x14   :  { %p3030_p9 = scmp.lt.u32.totalorder %s3026_s27, %s3796_s5 }
  0x16   :  { %p3032_p10 = pnand %p3030_p9, %p3027_p8 }
  0x18   :  { %3035 = shalt.err (!%p3032_p10)
}
  0x19   :  { %s3036_s12 = scalar_lea.vmem %s42_s24, 1024  ;;  %p3041_p12 = scmp.lt.s32.totalorder %s42_s24, %s42_s24 }
  0x1a   :  { %p3037_p11 = scmp.ne.s32.totalorder %s42_s24, %s3036_s12  ;;  %p3042_p13 = scmp.lt.s32.totalorder %s3036_s12, %s3036_s12 }
  0x1c   :  { %p3043_p0 = por %p3042_p13, %p3041_p12 }
  0x1e   :  { %p3044_p1 = pnand %p3043_p0, %p3037_p11 }
  0x20   :  { %3047 = shalt.err (!%p3044_p1)
}
  0x21   :  { %47 = dma.hbm_to_vmem [thread:$0]  %s3796_s5, 1024, %s42_s24, [#allocation7], %s3053_s19, %s3053_s19, %s3054_s20  }
  0x22   :  { %3048 = dma.done.wait [#allocation5], 1024  }
  0x23   :  { %3049 = vsyncadd [#allocation5], 4294966272 }
  0x24   :  { %3050 = dma.done.wait [#allocation7], 1024  }
  0x25   :  { %3051 = vsyncadd [#allocation7], 4294966272  ;;  %v3056_v0 = vmov 0.0   ;;  %v76_v1 = vld [vmem:[%s3792_s1 + $0x8] sm:$0xff]  ;;  %v78_v2 = vld [vmem:[%s3792_s1 + $0x18] sm:$0xff]  ;;  %vm91_vm0 = vcmask 130048   ;;  %v60_v27 = vlaneseq }
  0x26   :  { %180 = vmatprep.mubr.f32.mxu0 %v3056_v0  ;;  %321 = vmatprep.mubr.f32.mxu1 %v3056_v0  ;;  %v246_v3 = vld [vmem:[#allocation4 + $0x8] sm:$0xff]  ;;  %v2707_v4 = vpack.c.bf16 %v78_v2, %v76_v1  ;;  %v248_v5 = vld [vmem:[#allocation4 + $0x18] sm:$0xff]  ;;  %v75_v6 = vld [vmem:[%s3792_s1] sm:$0xff]  ;;  %v3057_v56 = vmov 0.5   ;;  %vm253_vm4 = vcmask 261120   ;;  %vm385_vm5 = vcmask 523520  }
  0x27   :  { %v77_v7 = vld [vmem:[%s3792_s1 + $0x10] sm:$0xff]  ;;  %v3150_v8 = vpack.c.bf16 %v248_v5, %v246_v3  ;;  %v245_v10 = vld [vmem:[#allocation4] sm:$0xff]  ;;  %v250_v13 = vld [vmem:[#allocation4 + $0x28] sm:$0xff]  ;;  %v3216_v28 = vshrl.u32 %v60_v27, 7  ;;  %v61_v42 = vand.u32 127, %v60_v27  ;;  %vm1368_vm6 = vcmask 523264  }
  0x28   :  { %v2709_v9 = vpack.c.bf16 %v77_v7, %v75_v6  ;;  %v247_v11 = vld [vmem:[#allocation4 + $0x10] sm:$0xff]  ;;  %2708 = vmatprep.subr.bf16.mxu0 %v2707_v4  ;;  %v252_v14 = vld [vmem:[#allocation4 + $0x38] sm:$0xff]  ;;  %v249_v15 = vld [vmem:[#allocation4 + $0x20] sm:$0xff]  ;;  %vm3061_vm7 = vmmov 0   ;;  %vm2625_vm8 = vcmask 15360  }
  0x29   :  { %v3152_v12 = vpack.c.bf16 %v247_v11, %v245_v10  ;;  %2712 = vmatprep.subr.bf16.mxu1 %v3150_v8  ;;  %v67_v16 = vld [vmem:[%s3791_s0] sm:$0xff]  ;;  %v3158_v17 = vpack.c.bf16 %v252_v14, %v250_v13  ;;  %v251_v18 = vld [vmem:[#allocation4 + $0x30] sm:$0xff]  ;;  %v68_v20 = vld [vmem:[%s3791_s0 + $0x8] sm:$0xff]  ;;  %v87_v29 = vsub.s32 1, %v3216_v28  ;;  %v83_v31 = vsub.s32 0, %v3216_v28 }
  0x2a   :  { %2710 = vmatpush1.bf16.msra.mxu0 %v2709_v9  ;;  %v3161_v19 = vpack.c.bf16 %v251_v18, %v249_v15  ;;  %v69_v21 = vld [vmem:[%s3791_s0 + $0x10] sm:$0xff]  ;;  %v70_v22 = vld [vmem:[%s3791_s0 + $0x18] sm:$0xff]  ;;  %v71_v23 = vld [vmem:[%s3791_s0 + $0x20] sm:$0xff]  ;;  %vm62_vm1 = vcmp.ge.s32.totalorder %v61_v42, 64  ;;  %vm63_vm2 = vcmp.lt.s32.totalorder %v61_v42, 96 }
  0x2b   :  { %2714 = vmatpush1.bf16.msra.mxu1 %v3152_v12  ;;  %2744 = vmatprep.subr.bf16.mxu0 %v3150_v8  ;;  %v72_v24 = vld [vmem:[%s3791_s0 + $0x28] sm:$0xff]  ;;  %v73_v25 = vld [vmem:[%s3791_s0 + $0x30] sm:$0xff]  ;;  %v74_v26 = vld [vmem:[%s3791_s0 + $0x38] sm:$0xff]  ;;  %s3058_s0 = smov 64  }
  0x2c   :  { %2716 = vmatprep.subr.bf16.mxu1 %v3158_v17  ;;  %v79_v30 = vld [vmem:[%s3794_s3] sm:$0x3]  ;;  %vm64_vm3 = vmand %vm62_vm1, %vm63_vm2  ;;  %s3059_s3 = smov 32  }
  0x2d   :  { %2633 = vmatmul.mubr.msk.f32.vlgmr.msra.gmra.mrb[0].mxu0 %vm91_vm0, %v67_v16  ;;  %v88_v32 = vrot.slane %v79_v30, %v87_v29  ;;  %v84_v33 = vrot.slane %v79_v30, %v83_v31  ;;  %v3241_v57 = vsel %vm64_vm3, 1.0, %v3057_v56  ;;  %v3245_v62 = vsel %vm64_vm3, 0.0, %v3057_v56 }
  0x2e   :  { %186 = vmatprep.mubr.f32.mxu0 %v3056_v0  ;;  %2746 = vmatpush1.bf16.msra.mxu0 %v3152_v12 }
  0x2f   :  { %2718 = vmatpush1.bf16.msra.mxu1 %v3161_v19  ;;  %2748 = vmatprep.subr.bf16.mxu0 %v3158_v17 }
  0x30   :  { %2720 = vmatprep.subr.bf16.mxu1 %v3150_v8 }
  0x31   :  { %2634 = vmatmul.mubr.msk.f32.gmra.mrb[2].mxu0 %vm91_vm0, %v68_v20 }
  0x32   :  { %322 = vmatmul.mubr.f32.vlgmr.msra.gmra.mrb[0].mxu1 %v3056_v0  ;;  %192 = vmatprep.mubr.f32.mxu0 %v3056_v0 }
  0x33   :  { %326 = vmatprep.mubr.f32.mxu1 %v3056_v0  ;;  %2722 = vmatpush1.bf16.msra.mxu1 %v3152_v12 }
  0x34   :  { %2724 = vmatprep.subr.bf16.mxu1 %v3158_v17  ;;  %2750 = vmatpush1.bf16.msra.mxu0 %v3161_v19 }
  0x35   :  { %2635 = vmatmul.mubr.msk.f32.gmra.mrb[4].mxu0 %vm91_vm0, %v69_v21  ;;  %2760 = vmatprep.subr.bf16.mxu0 %v3150_v8 }
  0x36   :  { %198 = vmatprep.mubr.f32.mxu0 %v3056_v0  ;;  %327 = vmatmul.mubr.f32.gmra.mrb[2].mxu1 %v3056_v0 }
  0x37   :  { %2726 = vmatpush1.bf16.msra.mxu1 %v3161_v19  ;;  %457 = vmatprep.mubr.f32.mxu1 %v3056_v0 }
  0x38   :  { %2728 = vmatprep.subr.bf16.mxu1 %v3150_v8 }
  0x39   :  { %2636 = vmatmul.mubr.msk.f32.gmra.mrb[6].mxu0 %vm91_vm0, %v70_v22 }
  0x3a   :  { %204 = vmatprep.mubr.f32.mxu0 %v3056_v0 }
  0x3d   :  { %2637 = vmatmul.mubr.msk.f32.gmra.mrb[8].mxu0 %vm91_vm0, %v71_v23 }
  0x3e   :  { %210 = vmatprep.mubr.f32.mxu0 %v3056_v0 }
  0x41   :  { %2638 = vmatmul.mubr.msk.f32.gmra.mrb[10].mxu0 %vm91_vm0, %v72_v24 }
  0x42   :  { %216 = vmatprep.mubr.f32.mxu0 %v3056_v0 }
  0x45   :  { %2639 = vmatmul.mubr.msk.f32.gmra.mrb[12].mxu0 %vm91_vm0, %v73_v25 }
  0x46   :  { %222 = vmatprep.mubr.f32.mxu0 %v3056_v0 }
  0x49   :  { %2640 = vmatmul.mubr.msk.f32.gmra.mrb[14].mxu0 %vm91_vm0, %v74_v26 }
  0x4a   :  { %862 = vmatprep.mubr.f32.mxu0 %v3056_v0 }
 0x100   :  { %v182_v34 = vpop.f32.mrb[0].mxu0 }
 0x101   :  { %v184_v35 = vpop.f32.mrb[1].mxu0  ;;  %v183_v37 = vadd.f32 %v182_v34, %v84_v33 }
 0x102   :  { %v3227_v36 = vadd.f32 %v184_v35, %v88_v32 }
 0x104   :  { %v188_v38 = vpop.f32.mrb[2].mxu0 }
 0x105   :  { %v3229_v39 = vadd.f32 %v188_v38, %v84_v33  ;;  %v323_v40 = vpop.f32.mrb[0].mxu1  ;;  %v190_v41 = vpop.f32.mrb[3].mxu0 }
 0x106   :  { %v334_v43 = vadd.f32 %v323_v40, %v183_v37  ;;  %v3231_v44 = vadd.f32 %v190_v41, %v88_v32  ;;  %v325_v45 = vpop.f32.mrb[1].mxu1 }
 0x108   :  { %2880 = vtanh.f32 %v334_v43  ;;  %v194_v46 = vpop.f32.mrb[4].mxu0 }
 0x109   :  { %v3233_v47 = vadd.f32 %v194_v46, %v84_v33  ;;  %v196_v48 = vpop.f32.mrb[5].mxu0  ;;  %v328_v49 = vpop.f32.mrb[2].mxu1 }
 0x10a   :  { %v3235_v50 = vadd.f32 %v196_v48, %v88_v32  ;;  %v329_v51 = vpop.f32.mrb[3].mxu1 }
 0x10c   :  { %v200_v52 = vpop.f32.mrb[6].mxu0 }
 0x10d   :  { %v3237_v53 = vadd.f32 %v200_v52, %v84_v33  ;;  %v202_v54 = vpop.f32.mrb[7].mxu0 }
 0x10e   :  { %v3239_v55 = vadd.f32 %v202_v54, %v88_v32 }
 0x110   :  { %v206_v58 = vpop.f32.mrb[8].mxu0 }
 0x111   :  { %v3243_v59 = vadd.f32 %v206_v58, %v84_v33  ;;  %v208_v60 = vpop.f32.mrb[9].mxu0 }
 0x112   :  { %v2881_v61 = vpop.eup %2880  ;;  %v3247_v63 = vadd.f32 %v208_v60, %v88_v32 }
 0x113   :  { %v338_v1 = vmul.f32 %v2881_v61, %v3241_v57 }
 0x114   :  { %v212_v2 = vpop.f32.mrb[10].mxu0 }
 0x115   :  { %v3250_v3 = vadd.f32 %v212_v2, %v84_v33  ;;  %v214_v4 = vpop.f32.mrb[11].mxu0  ;;  %v340_v5 = vadd.f32 %v338_v1, %v3245_v62 }
 0x116   :  { %v3253_v6 = vadd.f32 %v214_v4, %v88_v32 }
 0x117   :  { %346 = vrot.lane.b32.xlu0 %v340_v5, %s3058_s0  ;;  %v342_v27 = vmul.f32 0.0, %v340_v5 }
 0x118   :  { %v218_v7 = vpop.f32.mrb[12].mxu0 }
 0x119   :  { %v3256_v9 = vadd.f32 %v218_v7, %v84_v33  ;;  %v220_v10 = vpop.f32.mrb[13].mxu0 }
 0x11a   :  { %v221_v11 = vadd.f32 %v220_v10, %v88_v32 }
 0x11c   :  { %v224_v13 = vpop.f32.mrb[14].mxu0 }
 0x11d   :  { %v3258_v14 = vadd.f32 %v224_v13, %v84_v33  ;;  %v226_v15 = vpop.f32.mrb[15].mxu0 }
 0x11e   :  { %v227_v16 = vadd.f32 %v226_v15, %v88_v32 }
 0x120   :  { %v335_v18 = vadd.f32 %v329_v51, %v227_v16 }
 0x122   :  { %2882 = vtanh.f32 %v335_v18 }
 0x12c   :  { %v2883_v20 = vpop.eup %2882 }
 0x12d   :  { %v339_v21 = vmul.f32 %v2883_v20, %v3241_v57 }
 0x12f   :  { %v341_v22 = vadd.f32 %v339_v21, %v3245_v62 }
 0x131   :  { %348 = vrot.lane.b32.xlu0 %v341_v22, %s3058_s0  ;;  %v343_v34 = vmul.f32 0.0, %v341_v22 }
 0x189   :  { %v347_v23 = vpop.permute.xlu0 %346 }
 0x18a   :  { %v352_v24 = vmul.f32 %v347_v23, %v340_v5 }
 0x18c   :  { %356 = vrot.lane.b32.xlu1 %v352_v24, %s3059_s3 }
 0x1a3   :  { %v349_v25 = vpop.permute.xlu0 %348 }
 0x1a4   :  { %v353_v26 = vmul.f32 %v349_v25, %v341_v22 }
 0x1a6   :  { %358 = vrot.lane.b32.xlu1 %v353_v26, %s3059_s3 }
 0x1fe   :  { %v357_v30 = vpop.permute.xlu1 %356 }
 0x1ff   :  { %v362_v32 = vadd.f32 %v357_v30, %v342_v27 }
 0x201   :  { %2884 = vtanh.f32 %v362_v32 }
 0x20b   :  { %v2885_v33 = vpop.eup %2884 }
 0x20c   :  { %368 = vrot.lane.b32.xlu0 %v2885_v33, %s3058_s0 }
 0x218   :  { %v359_v35 = vpop.permute.xlu1 %358 }
 0x219   :  { %v363_v37 = vadd.f32 %v359_v35, %v343_v34 }
 0x21b   :  { %2886 = vtanh.f32 %v363_v37 }
 0x225   :  { %v2887_v38 = vpop.eup %2886 }
 0x226   :  { %370 = vrot.lane.b32.xlu1 %v2887_v38, %s3058_s0 }
 0x27e   :  { %v369_v40 = vpop.permute.xlu0 %368 }
 0x27f   :  { %v374_v41 = vmul.f32 %v369_v40, %v340_v5 }
 0x281   :  { %377 = vrot.lane.b32.xlu0 %v374_v41, %s3059_s3 }
 0x298   :  { %v371_v42 = vpop.permute.xlu1 %370 }
 0x299   :  { %v3268_v43 = vmul.f32 %v371_v42, %v341_v22 }
 0x29b   :  { %387 = vrot.lane.b32.xlu1 %v3268_v43, %s3059_s3 }
 0x2f3   :  { %v378_v45 = vpop.permute.xlu0 %377 }
 0x2f4   :  { %380 = vst.msk [vmem:[#allocation3] sm:$0xff] %vm253_vm4, %v378_v45  ;;  %2641 = vmatmul.mubr.msk.f32.vlgmr.msra.gmra.mrb[4].mxu1 %vm253_vm4, %v378_v45 }
 0x2f5   :  { %462 = vmatprep.mubr.f32.mxu1 %v3056_v0  ;;  %2730 = vmatpush1.bf16.msra.mxu1 %v3152_v12 }
 0x2f6   :  { %2732 = vmatprep.subr.bf16.mxu1 %v3158_v17 }
 0x2f9   :  { %2734 = vmatpush1.bf16.msra.mxu1 %v3161_v19 }
 0x2fa   :  { %2736 = vmatprep.subr.bf16.mxu1 %v3150_v8 }
 0x30d   :  { %v388_v46 = vpop.permute.xlu1 %387 }
 0x30e   :  { %2642 = vmatmul.mubr.msk.f32.gmra.mrb[6].mxu1 %vm253_vm4, %v388_v46 }
 0x30f   :  { %592 = vmatprep.mubr.f32.mxu1 %v3056_v0 }
 0x3c7   :  { %v459_v48 = vpop.f32.mrb[4].mxu1 }
 0x3c8   :  { %v470_v49 = vadd.f32 %v459_v48, %v3229_v39  ;;  %v461_v51 = vpop.f32.mrb[5].mxu1 }
 0x3ca   :  { %2888 = vtanh.f32 %v470_v49 }
 0x3d4   :  { %v2889_v52 = vpop.eup %2888 }
 0x3d5   :  { %v474_v54 = vmul.f32 %v2889_v52, %v3241_v57 }
 0x3d7   :  { %v476_v56 = vadd.f32 %v474_v54, %v3245_v62 }
 0x3d9   :  { %482 = vrot.lane.b32.xlu0 %v476_v56, %s3058_s0  ;;  %v478_v13 = vmul.f32 %v476_v56, %v362_v32 }
 0x3e1   :  { %v464_v58 = vpop.f32.mrb[6].mxu1 }
 0x3e2   :  { %v465_v60 = vpop.f32.mrb[7].mxu1 }
 0x3e3   :  { %v471_v61 = vadd.f32 %v465_v60, %v221_v11 }
 0x3e5   :  { %2890 = vtanh.f32 %v471_v61 }
 0x3ef   :  { %v2891_v1 = vpop.eup %2890 }
 0x3f0   :  { %v475_v2 = vmul.f32 %v2891_v1, %v3241_v57 }
 0x3f2   :  { %v477_v4 = vadd.f32 %v475_v2, %v3245_v62 }
 0x3f4   :  { %484 = vrot.lane.b32.xlu1 %v477_v4, %s3058_s0  ;;  %v479_v18 = vmul.f32 %v477_v4, %v363_v37 }
 0x44b   :  { %v483_v39 = vpop.permute.xlu0 %482 }
 0x44c   :  { %v488_v5 = vmul.f32 %v483_v39, %v476_v56 }
 0x44e   :  { %492 = vrot.lane.b32.xlu0 %v488_v5, %s3059_s3 }
 0x466   :  { %v485_v7 = vpop.permute.xlu1 %484 }
 0x467   :  { %v489_v10 = vmul.f32 %v485_v7, %v477_v4 }
 0x469   :  { %494 = vrot.lane.b32.xlu1 %v489_v10, %s3059_s3 }
 0x4c0   :  { %v493_v15 = vpop.permute.xlu0 %492 }
 0x4c1   :  { %v498_v16 = vadd.f32 %v493_v15, %v478_v13 }
 0x4c3   :  { %2892 = vtanh.f32 %v498_v16 }
 0x4cd   :  { %v2893_v11 = vpop.eup %2892 }
 0x4ce   :  { %504 = vrot.lane.b32.xlu0 %v2893_v11, %s3058_s0 }
 0x4db   :  { %v495_v20 = vpop.permute.xlu1 %494 }
 0x4dc   :  { %v499_v21 = vadd.f32 %v495_v20, %v479_v18 }
 0x4de   :  { %2894 = vtanh.f32 %v499_v21 }
 0x4e8   :  { %v2895_v22 = vpop.eup %2894 }
 0x4e9   :  { %506 = vrot.lane.b32.xlu1 %v2895_v22, %s3058_s0 }
 0x540   :  { %v505_v23 = vpop.permute.xlu0 %504 }
 0x541   :  { %v510_v24 = vmul.f32 %v505_v23, %v476_v56 }
 0x543   :  { %513 = vrot.lane.b32.xlu0 %v510_v24, %s3059_s3 }
 0x55b   :  { %v507_v25 = vpop.permute.xlu1 %506 }
 0x55c   :  { %v3293_v26 = vmul.f32 %v507_v25, %v477_v4 }
 0x55e   :  { %522 = vrot.lane.b32.xlu1 %v3293_v26, %s3059_s3 }
 0x5b5   :  { %v514_v27 = vpop.permute.xlu0 %513 }
 0x5b6   :  { %516 = vst.msk [vmem:[#allocation3 + $0x8] sm:$0xff] %vm253_vm4, %v514_v27  ;;  %2643 = vmatmul.mubr.msk.f32.vlgmr.msra.gmra.mrb[8].mxu1 %vm253_vm4, %v514_v27 }
 0x5b7   :  { %597 = vmatprep.mubr.f32.mxu1 %v3056_v0  ;;  %2738 = vmatpush1.bf16.msra.mxu1 %v3152_v12 }
 0x5b8   :  { %2740 = vmatprep.subr.bf16.mxu1 %v3158_v17 }
 0x5bb   :  { %2742 = vmatpush1.bf16.msra.mxu1 %v3161_v19 }
 0x5bc   :  { %2752 = vmatprep.subr.bf16.mxu1 %v3150_v8 }
 0x5d0   :  { %v523_v30 = vpop.permute.xlu1 %522 }
 0x5d1   :  { %2644 = vmatmul.mubr.msk.f32.gmra.mrb[10].mxu1 %vm253_vm4, %v523_v30 }
 0x5d2   :  { %727 = vmatprep.mubr.f32.mxu1 %v3056_v0 }
 0x689   :  { %v594_v32 = vpop.f32.mrb[8].mxu1 }
 0x68a   :  { %v605_v33 = vadd.f32 %v594_v32, %v3233_v47  ;;  %v596_v34 = vpop.f32.mrb[9].mxu1 }
 0x68c   :  { %2896 = vtanh.f32 %v605_v33 }
 0x696   :  { %v2897_v35 = vpop.eup %2896 }
 0x697   :  { %v609_v37 = vmul.f32 %v2897_v35, %v3241_v57 }
 0x699   :  { %v611_v38 = vadd.f32 %v609_v37, %v3245_v62 }
 0x69b   :  { %617 = vrot.lane.b32.xlu0 %v611_v38, %s3058_s0  ;;  %v613_v54 = vmul.f32 %v611_v38, %v498_v16 }
 0x6a4   :  { %v599_v40 = vpop.f32.mrb[10].mxu1 }
 0x6a5   :  { %v600_v41 = vpop.f32.mrb[11].mxu1 }
 0x6a6   :  { %v606_v42 = vadd.f32 %v600_v41, %v3253_v6 }
 0x6a8   :  { %2898 = vtanh.f32 %v606_v42 }
 0x6b2   :  { %v2899_v45 = vpop.eup %2898 }
 0x6b3   :  { %v610_v46 = vmul.f32 %v2899_v45, %v3241_v57 }
 0x6b5   :  { %v612_v48 = vadd.f32 %v610_v46, %v3245_v62 }
 0x6b7   :  { %619 = vrot.lane.b32.xlu1 %v612_v48, %s3058_s0  ;;  %v614_v60 = vmul.f32 %v612_v48, %v499_v21 }
 0x70d   :  { %v618_v47 = vpop.permute.xlu0 %617 }
 0x70e   :  { %v623_v49 = vmul.f32 %v618_v47, %v611_v38 }
 0x710   :  { %627 = vrot.lane.b32.xlu0 %v623_v49, %s3059_s3 }
 0x729   :  { %v620_v51 = vpop.permute.xlu1 %619 }
 0x72a   :  { %v624_v52 = vmul.f32 %v620_v51, %v612_v48 }
 0x72c   :  { %629 = vrot.lane.b32.xlu1 %v624_v52, %s3059_s3 }
 0x782   :  { %v628_v56 = vpop.permute.xlu0 %627 }
 0x783   :  { %v633_v58 = vadd.f32 %v628_v56, %v613_v54 }
 0x785   :  { %2900 = vtanh.f32 %v633_v58 }
 0x78f   :  { %v2901_v6 = vpop.eup %2900 }
 0x790   :  { %639 = vrot.lane.b32.xlu0 %v2901_v6, %s3058_s0 }
 0x79e   :  { %v630_v61 = vpop.permute.xlu1 %629 }
 0x79f   :  { %v634_v1 = vadd.f32 %v630_v61, %v614_v60 }
 0x7a1   :  { %2902 = vtanh.f32 %v634_v1 }
 0x7ab   :  { %v2903_v2 = vpop.eup %2902 }
 0x7ac   :  { %641 = vrot.lane.b32.xlu1 %v2903_v2, %s3058_s0 }
 0x802   :  { %v640_v4 = vpop.permute.xlu0 %639 }
 0x803   :  { %v645_v39 = vmul.f32 %v640_v4, %v611_v38 }
 0x805   :  { %648 = vrot.lane.b32.xlu0 %v645_v39, %s3059_s3 }
 0x81e   :  { %v642_v5 = vpop.permute.xlu1 %641 }
 0x81f   :  { %v3319_v7 = vmul.f32 %v642_v5, %v612_v48 }
 0x821   :  { %657 = vrot.lane.b32.xlu1 %v3319_v7, %s3059_s3 }
 0x877   :  { %v649_v10 = vpop.permute.xlu0 %648 }
 0x878   :  { %651 = vst.msk [vmem:[#allocation3 + $0x10] sm:$0xff] %vm253_vm4, %v649_v10  ;;  %2645 = vmatmul.mubr.msk.f32.vlgmr.msra.gmra.mrb[12].mxu1 %vm253_vm4, %v649_v10 }
 0x879   :  { %732 = vmatprep.mubr.f32.mxu1 %v3056_v0  ;;  %2754 = vmatpush1.bf16.msra.mxu1 %v3152_v12 }
 0x87a   :  { %2756 = vmatprep.subr.bf16.mxu1 %v3158_v17 }
 0x87d   :  { %2758 = vmatpush1.bf16.msra.mxu1 %v3161_v19 }
 0x87e   :  { %2768 = vmatprep.subr.bf16.mxu1 %v3150_v8 }
 0x893   :  { %v658_v13 = vpop.permute.xlu1 %657 }
 0x894   :  { %2646 = vmatmul.mubr.msk.f32.gmra.mrb[14].mxu1 %vm253_vm4, %v658_v13 }
 0x895   :  { %997 = vmatprep.mubr.f32.mxu1 %v3056_v0 }
 0x94b   :  { %v729_v15 = vpop.f32.mrb[12].mxu1 }
 0x94c   :  { %v740_v16 = vadd.f32 %v729_v15, %v3237_v53  ;;  %v731_v11 = vpop.f32.mrb[13].mxu1 }
 0x94e   :  { %2904 = vtanh.f32 %v740_v16 }
 0x958   :  { %v2905_v18 = vpop.eup %2904 }
 0x959   :  { %v744_v20 = vmul.f32 %v2905_v18, %v3241_v57 }
 0x95b   :  { %v746_v21 = vadd.f32 %v744_v20, %v3245_v62 }
 0x95d   :  { %752 = vrot.lane.b32.xlu0 %v746_v21, %s3058_s0  ;;  %v748_v34 = vmul.f32 %v746_v21, %v633_v58 }
 0x967   :  { %v734_v22 = vpop.f32.mrb[14].mxu1 }
 0x968   :  { %v735_v23 = vpop.f32.mrb[15].mxu1 }
 0x969   :  { %v741_v8 = vadd.f32 %v735_v23, %v3247_v63 }
 0x96b   :  { %2906 = vtanh.f32 %v741_v8 }
 0x975   :  { %v2907_v24 = vpop.eup %2906 }
 0x976   :  { %v745_v25 = vmul.f32 %v2907_v24, %v3241_v57 }
 0x978   :  { %v747_v27 = vadd.f32 %v745_v25, %v3245_v62 }
 0x97a   :  { %754 = vrot.lane.b32.xlu1 %v747_v27, %s3058_s0  ;;  %v749_v38 = vmul.f32 %v747_v27, %v634_v1 }
 0x9cf   :  { %v753_v53 = vpop.permute.xlu0 %752 }
 0x9d0   :  { %v758_v30 = vmul.f32 %v753_v53, %v746_v21 }
 0x9d2   :  { %762 = vrot.lane.b32.xlu0 %v758_v30, %s3059_s3 }
 0x9ec   :  { %v755_v32 = vpop.permute.xlu1 %754 }
 0x9ed   :  { %v759_v33 = vmul.f32 %v755_v32, %v747_v27 }
 0x9ef   :  { %764 = vrot.lane.b32.xlu1 %v759_v33, %s3059_s3 }
 0xa44   :  { %v763_v35 = vpop.permute.xlu0 %762 }
 0xa45   :  { %v768_v37 = vadd.f32 %v763_v35, %v748_v34 }
 0xa47   :  { %2908 = vtanh.f32 %v768_v37 }
 0xa51   :  { %v2909_v63 = vpop.eup %2908 }
 0xa52   :  { %774 = vrot.lane.b32.xlu0 %v2909_v63, %s3058_s0 }
 0xa61   :  { %v765_v40 = vpop.permute.xlu1 %764 }
 0xa62   :  { %v769_v41 = vadd.f32 %v765_v40, %v749_v38 }
 0xa64   :  { %2910 = vtanh.f32 %v769_v41 }
 0xa6e   :  { %v2911_v42 = vpop.eup %2910 }
 0xa6f   :  { %776 = vrot.lane.b32.xlu1 %v2911_v42, %s3058_s0 }
 0xac4   :  { %v775_v45 = vpop.permute.xlu0 %774 }
 0xac5   :  { %v780_v46 = vmul.f32 %v775_v45, %v746_v21 }
 0xac7   :  { %783 = vrot.lane.b32.xlu0 %v780_v46, %s3059_s3 }
 0xae1   :  { %v777_v48 = vpop.permute.xlu1 %776 }
 0xae2   :  { %v3345_v47 = vmul.f32 %v777_v48, %v747_v27 }
 0xae4   :  { %792 = vrot.lane.b32.xlu1 %v3345_v47, %s3059_s3 }
 0xb39   :  { %v784_v49 = vpop.permute.xlu0 %783 }
 0xb3a   :  { %786 = vst.msk [vmem:[#allocation3 + $0x18] sm:$0xff] %vm253_vm4, %v784_v49  ;;  %2647 = vmatmul.mubr.msk.f32.vlgmr.msra.gmra.mrb[16].mxu0 %vm253_vm4, %v784_v49 }
 0xb3b   :  { %867 = vmatprep.mubr.f32.mxu0 %v3056_v0  ;;  %2762 = vmatpush1.bf16.msra.mxu0 %v3152_v12 }
 0xb3c   :  { %2764 = vmatprep.subr.bf16.mxu0 %v3158_v17 }
 0xb3f   :  { %2766 = vmatpush1.bf16.msra.mxu0 %v3161_v19 }
 0xb56   :  { %v793_v51 = vpop.permute.xlu1 %792 }
 0xb57   :  { %2648 = vmatmul.mubr.msk.f32.gmra.mrb[18].mxu0 %vm253_vm4, %v793_v51 }
 0xb58   :  { %1132 = vmatprep.mubr.f32.mxu0 %v3056_v0 }
 0xc0d   :  { %v864_v52 = vpop.f32.mrb[16].mxu0 }
 0xc0e   :  { %v875_v54 = vadd.f32 %v864_v52, %v3243_v59  ;;  %v866_v56 = vpop.f32.mrb[17].mxu0 }
 0xc10   :  { %2912 = vtanh.f32 %v875_v54 }
 0xc1a   :  { %v2913_v58 = vpop.eup %2912 }
 0xc1b   :  { %v879_v6 = vmul.f32 %v2913_v58, %v3241_v57 }
 0xc1d   :  { %v881_v60 = vadd.f32 %v879_v6, %v3245_v62 }
 0xc1f   :  { %887 = vrot.lane.b32.xlu0 %v881_v60, %s3058_s0  ;;  %v883_v16 = vmul.f32 %v881_v60, %v768_v37 }
 0xc2a   :  { %v869_v61 = vpop.f32.mrb[18].mxu0 }
 0xc2b   :  { %v870_v1 = vpop.f32.mrb[19].mxu0 }
 0xc2c   :  { %v876_v2 = vadd.f32 %v870_v1, %v3239_v55 }
 0xc2e   :  { %2914 = vtanh.f32 %v876_v2 }
 0xc38   :  { %v2915_v4 = vpop.eup %2914 }
 0xc39   :  { %v880_v39 = vmul.f32 %v2915_v4, %v3241_v57 }
 0xc3b   :  { %v882_v5 = vadd.f32 %v880_v39, %v3245_v62 }
 0xc3d   :  { %889 = vrot.lane.b32.xlu1 %v882_v5, %s3058_s0  ;;  %v884_v20 = vmul.f32 %v882_v5, %v769_v41 }
 0xc91   :  { %v888_v59 = vpop.permute.xlu0 %887 }
 0xc92   :  { %v893_v10 = vmul.f32 %v888_v59, %v881_v60 }
 0xc94   :  { %897 = vrot.lane.b32.xlu0 %v893_v10, %s3059_s3 }
 0xcaf   :  { %v890_v13 = vpop.permute.xlu1 %889 }
 0xcb0   :  { %v894_v15 = vmul.f32 %v890_v13, %v882_v5 }
 0xcb2   :  { %899 = vrot.lane.b32.xlu1 %v894_v15, %s3059_s3 }
 0xd06   :  { %v898_v11 = vpop.permute.xlu0 %897 }
 0xd07   :  { %v903_v18 = vadd.f32 %v898_v11, %v883_v16 }
 0xd09   :  { %2916 = vtanh.f32 %v903_v18 }
 0xd13   :  { %v2917_v55 = vpop.eup %2916 }
 0xd14   :  { %909 = vrot.lane.b32.xlu0 %v2917_v55, %s3058_s0 }
 0xd24   :  { %v900_v21 = vpop.permute.xlu1 %899 }
 0xd25   :  { %v904_v22 = vadd.f32 %v900_v21, %v884_v20 }
 0xd27   :  { %2918 = vtanh.f32 %v904_v22 }
 0xd31   :  { %v2919_v23 = vpop.eup %2918 }
 0xd32   :  { %911 = vrot.lane.b32.xlu1 %v2919_v23, %s3058_s0 }
 0xd86   :  { %v910_v8 = vpop.permute.xlu0 %909 }
 0xd87   :  { %v915_v24 = vmul.f32 %v910_v8, %v881_v60 }
 0xd89   :  { %918 = vrot.lane.b32.xlu0 %v915_v24, %s3059_s3 }
 0xda4   :  { %v912_v25 = vpop.permute.xlu1 %911 }
 0xda5   :  { %v3370_v27 = vmul.f32 %v912_v25, %v882_v5 }
 0xda7   :  { %927 = vrot.lane.b32.xlu1 %v3370_v27, %s3059_s3 }
 0xdfb   :  { %v3374_v53 = vpop.permute.xlu0 %918 }
 0xdfc   :  { %2649 = vmatmul.mubr.msk.f32.vlgmr.msra.gmra.mrb[16].mxu1 %vm253_vm4, %v3374_v53 }
 0xdfd   :  { %1002 = vmatprep.mubr.f32.mxu1 %v3056_v0  ;;  %2770 = vmatpush1.bf16.msra.mxu1 %v3152_v12 }
 0xdfe   :  { %2772 = vmatprep.subr.bf16.mxu1 %v3158_v17 }
 0xe01   :  { %2774 = vmatpush1.bf16.msra.mxu1 %v3161_v19 }
 0xe19   :  { %v928_v30 = vpop.permute.xlu1 %927 }
 0xe1a   :  { %2650 = vmatmul.mubr.msk.f32.gmra.mrb[18].mxu1 %vm253_vm4, %v928_v30 }
 0xe1b   :  { %1267 = vmatprep.mubr.f32.mxu1 %v3056_v0 }
 0xecf   :  { %v999_v32 = vpop.f32.mrb[16].mxu1 }
 0xed0   :  { %v1010_v33 = vadd.f32 %v999_v32, %v3250_v3  ;;  %v1001_v34 = vpop.f32.mrb[17].mxu1 }
 0xed2   :  { %2920 = vtanh.f32 %v1010_v33 }
 0xedc   :  { %v2921_v35 = vpop.eup %2920 }
 0xedd   :  { %v1014_v37 = vmul.f32 %v2921_v35, %v3241_v57 }
 0xedf   :  { %v1016_v63 = vadd.f32 %v1014_v37, %v3245_v62 }
 0xee1   :  { %1022 = vrot.lane.b32.xlu0 %v1016_v63, %s3058_s0  ;;  %v1018_v48 = vmul.f32 %v1016_v63, %v903_v18 }
 0xeed   :  { %v1004_v12 = vpop.f32.mrb[18].mxu1 }
 0xeee   :  { %v1005_v17 = vpop.f32.mrb[19].mxu1 }
 0xeef   :  { %v1011_v19 = vadd.f32 %v1005_v17, %v3235_v50 }
 0xef1   :  { %2922 = vtanh.f32 %v1011_v19 }
 0xefb   :  { %v2923_v38 = vpop.eup %2922 }
 0xefc   :  { %v1015_v40 = vmul.f32 %v2923_v38, %v3241_v57 }
 0xefe   :  { %v1017_v41 = vadd.f32 %v1015_v40, %v3245_v62 }
 0xf00   :  { %1024 = vrot.lane.b32.xlu1 %v1017_v41, %s3058_s0  ;;  %v1019_v52 = vmul.f32 %v1017_v41, %v904_v22 }
 0xf53   :  { %v1023_v3 = vpop.permute.xlu0 %1022 }
 0xf54   :  { %v1028_v42 = vmul.f32 %v1023_v3, %v1016_v63 }
 0xf56   :  { %1032 = vrot.lane.b32.xlu0 %v1028_v42, %s3059_s3 }
 0xf72   :  { %v1025_v45 = vpop.permute.xlu1 %1024 }
 0xf73   :  { %v1029_v46 = vmul.f32 %v1025_v45, %v1017_v41 }
 0xf75   :  { %1034 = vrot.lane.b32.xlu1 %v1029_v46, %s3059_s3 }
 0xfc8   :  { %v1033_v49 = vpop.permute.xlu0 %1032 }
 0xfc9   :  { %v1038_v51 = vadd.f32 %v1033_v49, %v1018_v48 }
 0xfcb   :  { %2924 = vtanh.f32 %v1038_v51 }
 0xfd5   :  { %v2925_v50 = vpop.eup %2924 }
 0xfd6   :  { %1044 = vrot.lane.b32.xlu0 %v2925_v50, %s3058_s0 }
 0xfe7   :  { %v1035_v54 = vpop.permute.xlu1 %1034 }
 0xfe8   :  { %v1039_v56 = vadd.f32 %v1035_v54, %v1019_v52 }
 0xfea   :  { %2926 = vtanh.f32 %v1039_v56 }
 0xff4   :  { %v2927_v58 = vpop.eup %2926 }
 0xff5   :  { %1046 = vrot.lane.b32.xlu1 %v2927_v58, %s3058_s0 }
0x1048   :  { %v1045_v6 = vpop.permute.xlu0 %1044 }
0x1049   :  { %v1050_v60 = vmul.f32 %v1045_v6, %v1016_v63 }
0x104b   :  { %1053 = vrot.lane.b32.xlu0 %v1050_v60, %s3059_s3 }
0x1067   :  { %v1047_v61 = vpop.permute.xlu1 %1046 }
0x1068   :  { %v3397_v1 = vmul.f32 %v1047_v61, %v1017_v41 }
0x106a   :  { %1062 = vrot.lane.b32.xlu1 %v3397_v1, %s3059_s3 }
0x10bd   :  { %v3401_v2 = vpop.permute.xlu0 %1053 }
0x10be   :  { %2651 = vmatmul.mubr.msk.f32.vlgmr.msra.gmra.mrb[20].mxu0 %vm253_vm4, %v3401_v2 }
0x10bf   :  { %1137 = vmatprep.mubr.f32.mxu0 %v3056_v0 }
0x10dc   :  { %v1063_v4 = vpop.permute.xlu1 %1062 }
0x10dd   :  { %2652 = vmatmul.mubr.msk.f32.gmra.mrb[22].mxu0 %vm253_vm4, %v1063_v4 }
0x10de   :  { %1457 = vmatprep.mubr.f32.mxu0 %v3056_v0 }
0x1191   :  { %v1134_v39 = vpop.f32.mrb[20].mxu0 }
0x1192   :  { %v1145_v5 = vadd.f32 %v1134_v39, %v3256_v9  ;;  %v1136_v59 = vpop.f32.mrb[21].mxu0 }
0x1194   :  { %2928 = vtanh.f32 %v1145_v5 }
0x119e   :  { %v2929_v10 = vpop.eup %2928 }
0x119f   :  { %v1149_v13 = vmul.f32 %v2929_v10, %v3241_v57 }
0x11a1   :  { %v1151_v15 = vadd.f32 %v1149_v13, %v3245_v62  ;;  %v1341_v13 = vld [vmem:[%s3795_s4 + $0x8] sm:$0xff] }
0x11a3   :  { %1157 = vrot.lane.b32.xlu0 %v1151_v15, %s3058_s0  ;;  %v1153_v24 = vmul.f32 %v1151_v15, %v1038_v51 }
0x11b0   :  { %v1139_v16 = vpop.f32.mrb[22].mxu0 }
0x11b1   :  { %v1140_v11 = vpop.f32.mrb[23].mxu0  ;;  %v1345_v16 = vld [vmem:[%s3795_s4 + $0x28] sm:$0xff] }
0x11b2   :  { %v1146_v18 = vadd.f32 %v1140_v11, %v3231_v44  ;;  %v1347_v11 = vld [vmem:[%s3795_s4 + $0x38] sm:$0xff] }
0x11b4   :  { %2930 = vtanh.f32 %v1146_v18 }
0x11be   :  { %v2931_v55 = vpop.eup %2930 }
0x11bf   :  { %v1150_v20 = vmul.f32 %v2931_v55, %v3241_v57  ;;  %v2779_v55 = vpack.c.bf16 %v1347_v11, %v1345_v16 }
0x11c1   :  { %v1152_v21 = vadd.f32 %v1150_v20, %v3245_v62  ;;  %v1344_v20 = vld [vmem:[%s3795_s4 + $0x20] sm:$0xff] }
0x11c3   :  { %1159 = vrot.lane.b32.xlu1 %v1152_v21, %s3058_s0  ;;  %v1154_v32 = vmul.f32 %v1152_v21, %v1039_v56 }
0x1215   :  { %v1158_v9 = vpop.permute.xlu0 %1157 }
0x1216   :  { %v1163_v22 = vmul.f32 %v1158_v9, %v1151_v15  ;;  %v1349_v9 = vld [vmem:[%s3795_s4 + $0x48] sm:$0xff] }
0x1218   :  { %1167 = vrot.lane.b32.xlu0 %v1163_v22, %s3059_s3  ;;  %v1351_v22 = vld [vmem:[%s3795_s4 + $0x58] sm:$0xff] }
0x1235   :  { %v1160_v23 = vpop.permute.xlu1 %1159 }
0x1236   :  { %v1164_v8 = vmul.f32 %v1160_v23, %v1152_v21 }
0x1238   :  { %1169 = vrot.lane.b32.xlu1 %v1164_v8, %s3059_s3  ;;  %v2783_v8 = vpack.c.bf16 %v1351_v22, %v1349_v9 }
0x128a   :  { %v1168_v25 = vpop.permute.xlu0 %1167 }
0x128b   :  { %v1173_v30 = vadd.f32 %v1168_v25, %v1153_v24 }
0x128d   :  { %2932 = vtanh.f32 %v1173_v30 }
0x1297   :  { %v2933_v44 = vpop.eup %2932 }
0x1298   :  { %1179 = vrot.lane.b32.xlu0 %v2933_v44, %s3058_s0 }
0x12aa   :  { %v1170_v33 = vpop.permute.xlu1 %1169 }
0x12ab   :  { %v1174_v34 = vadd.f32 %v1170_v33, %v1154_v32  ;;  %v1348_v33 = vld [vmem:[%s3795_s4 + $0x40] sm:$0xff] }
0x12ad   :  { %2934 = vtanh.f32 %v1174_v34 }
0x12b7   :  { %v2935_v35 = vpop.eup %2934 }
0x12b8   :  { %1181 = vrot.lane.b32.xlu1 %v2935_v35, %s3058_s0 }
0x130a   :  { %v1180_v37 = vpop.permute.xlu0 %1179 }
0x130b   :  { %v1185_v63 = vmul.f32 %v1180_v37, %v1151_v15  ;;  %v1342_v15 = vld [vmem:[%s3795_s4 + $0x10] sm:$0xff]  ;;  %v1353_v37 = vld [vmem:[%s3795_s4 + $0x68] sm:$0xff] }
0x130d   :  { %1188 = vrot.lane.b32.xlu0 %v1185_v63, %s3059_s3 }
0x132a   :  { %v1182_v12 = vpop.permute.xlu1 %1181 }
0x132b   :  { %v1186_v17 = vmul.f32 %v1182_v12, %v1152_v21  ;;  %v1346_v21 = vld [vmem:[%s3795_s4 + $0x30] sm:$0xff]  ;;  %v1352_v12 = vld [vmem:[%s3795_s4 + $0x60] sm:$0xff] }
0x132c   :  { %v2781_v23 = vpack.c.bf16 %v1346_v21, %v1344_v20 }
0x132d   :  { %1197 = vrot.lane.b32.xlu1 %v1186_v17, %s3059_s3 }
0x137f   :  { %v3422_v19 = vpop.permute.xlu0 %1188 }
0x1380   :  { %2653 = vmatmul.mubr.msk.f32.vlgmr.msra.gmra.mrb[20].mxu1 %vm253_vm4, %v3422_v19 }
0x1381   :  { %1272 = vmatprep.mubr.f32.mxu1 %v3056_v0 }
0x139f   :  { %v1198_v38 = vpop.permute.xlu1 %1197 }
0x13a0   :  { %2654 = vmatmul.mubr.msk.f32.gmra.mrb[22].mxu1 %vm253_vm4, %v1198_v38 }
0x13a1   :  { %1723 = vmatprep.mubr.f32.mxu1 %v3056_v0 }
0x1453   :  { %v1269_v40 = vpop.f32.mrb[20].mxu1 }
0x1454   :  { %v1280_v41 = vadd.f32 %v1269_v40, %v3258_v14  ;;  %v1271_v3 = vpop.f32.mrb[21].mxu1  ;;  %v1523_v40 = vld [vmem:[#allocation6 + $0x8] sm:$0xff] }
0x1456   :  { %2936 = vtanh.f32 %v1280_v41  ;;  %v1525_v41 = vld [vmem:[#allocation6 + $0x18] sm:$0xff] }
0x1457   :  { %v3512_v3 = vpack.c.bf16 %v1525_v41, %v1523_v40 }
0x1459   :  { %2800 = vmatprep.subr.bf16.mxu1 %v3512_v3 }
0x1460   :  { %v2937_v42 = vpop.eup %2936 }
0x1461   :  { %v1284_v45 = vmul.f32 %v2937_v42, %v3241_v57  ;;  %v1522_v42 = vld [vmem:[#allocation6] sm:$0xff] }
0x1463   :  { %v3432_v46 = vadd.f32 %v1284_v45, %v3245_v62  ;;  %v1524_v45 = vld [vmem:[#allocation6 + $0x10] sm:$0xff] }
0x1465   :  { %1292 = vrot.lane.b32.xlu1 %v3432_v46, %s3058_s0 }
0x1473   :  { %v1274_v48 = vpop.f32.mrb[22].mxu1 }
0x1474   :  { %v1275_v49 = vpop.f32.mrb[23].mxu1 }
0x1475   :  { %v1281_v51 = vadd.f32 %v1275_v49, %v3227_v36  ;;  %v1288_v36 = vmul.f32 %v3432_v46, %v1173_v30  ;;  %v3516_v49 = vpack.c.bf16 %v1524_v45, %v1522_v42 }
0x1477   :  { %2938 = vtanh.f32 %v1281_v51  ;;  %2802 = vmatpush1.bf16.msra.mxu1 %v3516_v49 }
0x1481   :  { %v2939_v50 = vpop.eup %2938 }
0x1482   :  { %v1285_v52 = vmul.f32 %v2939_v50, %v3241_v57  ;;  %v1527_v50 = vld [vmem:[#allocation6 + $0x28] sm:$0xff] }
0x1484   :  { %v3439_v14 = vadd.f32 %v1285_v52, %v3245_v62  ;;  %v1529_v52 = vld [vmem:[#allocation6 + $0x38] sm:$0xff] }
0x1486   :  { %1294 = vrot.lane.b32.xlu0 %v3439_v14, %s3058_s0  ;;  %v1289_v39 = vmul.f32 %v3439_v14, %v1174_v34  ;;  %v1350_v34 = vld [vmem:[%s3795_s4 + $0x50] sm:$0xff] }
0x1487   :  { %v2785_v35 = vpack.c.bf16 %v1350_v34, %v1348_v33 }
0x14d7   :  { %v1293_v54 = vpop.permute.xlu1 %1292 }
0x14d8   :  { %v1298_v56 = vmul.f32 %v1293_v54, %v3432_v46  ;;  %v3525_v54 = vpack.c.bf16 %v1529_v52, %v1527_v50 }
0x14da   :  { %1302 = vrot.lane.b32.xlu1 %v1298_v56, %s3059_s3  ;;  %v1526_v56 = vld [vmem:[#allocation6 + $0x20] sm:$0xff]  ;;  %2804 = vmatprep.subr.bf16.mxu1 %v3525_v54 }
0x14f8   :  { %v1295_v58 = vpop.permute.xlu0 %1294 }
0x14f9   :  { %v1299_v6 = vmul.f32 %v1295_v58, %v3439_v14  ;;  %v1528_v58 = vld [vmem:[#allocation6 + $0x30] sm:$0xff] }
0x14fb   :  { %1304 = vrot.lane.b32.xlu0 %v1299_v6, %s3059_s3 }
0x154c   :  { %v1303_v60 = vpop.permute.xlu1 %1302 }
0x154d   :  { %v1308_v61 = vadd.f32 %v1303_v60, %v1288_v36 }
0x154f   :  { %2940 = vtanh.f32 %v1308_v61 }
0x1559   :  { %v2941_v4 = vpop.eup %2940 }
0x155a   :  { %1314 = vrot.lane.b32.xlu1 %v2941_v4, %s3058_s0 }
0x155e   :  { %1193 = vrot.lane.b32.xlu1 %v1186_v17, %s3058_s0  ;;  %v1354_v17 = vld [vmem:[%s3795_s4 + $0x70] sm:$0xff] }
0x155f   :  { %v2789_v38 = vpack.c.bf16 %v1354_v17, %v1352_v12 }
0x1562   :  { %923 = vrot.lane.b32.xlu1 %v3370_v27, %s3058_s0  ;;  %v1343_v27 = vld [vmem:[%s3795_s4 + $0x18] sm:$0xff] }
0x1566   :  { %653 = vrot.lane.b32.xlu1 %v3319_v7, %s3058_s0  ;;  %v2775_v7 = vpack.c.bf16 %v1343_v27, %v1341_v13 }
0x1568   :  { %2776 = vmatprep.subr.bf16.mxu0 %v2775_v7 }
0x156a   :  { %382 = vrot.lane.b32.xlu1 %v3268_v43, %s3058_s0  ;;  %v1340_v43 = vld [vmem:[%s3795_s4] sm:$0xff] }
0x156b   :  { %v2777_v18 = vpack.c.bf16 %v1342_v15, %v1340_v43 }
0x156d   :  { %v1305_v5 = vpop.permute.xlu0 %1304  ;;  %2778 = vmatpush1.bf16.msra.mxu0 %v2777_v18 }
0x156e   :  { %v1309_v59 = vadd.f32 %v1305_v5, %v1289_v39  ;;  %2780 = vmatprep.subr.bf16.mxu0 %v2779_v55 }
0x1570   :  { %2942 = vtanh.f32 %v1309_v59 }
0x1571   :  { %2782 = vmatpush1.bf16.msra.mxu0 %v2781_v23 }
0x1572   :  { %2784 = vmatprep.subr.bf16.mxu0 %v2783_v8 }
0x1575   :  { %2786 = vmatpush1.bf16.msra.mxu0 %v2785_v35 }
0x157a   :  { %v2943_v10 = vpop.eup %2942 }
0x157b   :  { %1316 = vrot.lane.b32.xlu0 %v2943_v10, %s3058_s0  ;;  %v1356_v10 = vld [vmem:[%s3797_s6] sm:$0x3] }
0x157c   :  { %v1361_v13 = vrot.slane %v1356_v10, %v83_v31  ;;  %v1365_v27 = vrot.slane %v1356_v10, %v87_v29 }
0x15cc   :  { %v1315_v24 = vpop.permute.xlu1 %1314 }
0x15cd   :  { %v1320_v6 = vmul.f32 %v1315_v24, %v3432_v46 }
0x15d0   :  { %v1194_v25 = vpop.permute.xlu1 %1193 }
0x15d1   :  { %1196 = vst.msk [vmem:[#allocation3 + $0x8] sm:$0xff] %vm385_vm5, %v1194_v25 }
0x15d4   :  { %v924_v30 = vpop.permute.xlu1 %923 }
0x15d5   :  { %926 = vst.msk [vmem:[#allocation3 + $0x18] sm:$0xff] %vm385_vm5, %v924_v30 }
0x15d8   :  { %v654_v44 = vpop.permute.xlu1 %653  ;;  %v1333_v46 = vld [vmem:[#allocation3 + $0x8] sm:$0xff] }
0x15d9   :  { %656 = vst.msk [vmem:[#allocation3 + $0x28] sm:$0xff] %vm385_vm5, %v654_v44 }
0x15da   :  { %1056 = vst.msk [vmem:[#allocation3 + $0x28] sm:$0xff] %vm253_vm4, %v3401_v2  ;;  %v1355_v2 = vld [vmem:[%s3795_s4 + $0x78] sm:$0xff] }
0x15db   :  { %v2787_v63 = vpack.c.bf16 %v1355_v2, %v1353_v37 }
0x15dc   :  { %v383_v32 = vpop.permute.xlu1 %382  ;;  %v1335_v4 = vld [vmem:[#allocation3 + $0x18] sm:$0xff] }
0x15dd   :  { %386 = vst.msk [vmem:[#allocation3 + $0x38] sm:$0xff] %vm385_vm5, %v383_v32  ;;  %2788 = vmatprep.subr.bf16.mxu0 %v2787_v63 }
0x15de   :  { %2790 = vmatpush1.bf16.msra.mxu0 %v2789_v38 }
0x15df   :  { %2792 = vmatprep.subr.bf16.mxu0 %v3512_v3 }
0x15e1   :  { %v1337_v39 = vld [vmem:[#allocation3 + $0x28] sm:$0xff] }
0x15ed   :  { %v1317_v48 = vpop.permute.xlu0 %1316 }
0x15ee   :  { %v1321_v51 = vmul.f32 %v1317_v48, %v3439_v14  ;;  %v3530_v14 = vpack.c.bf16 %v1528_v58, %v1526_v56 }
0x15f0   :  { %1328 = vrot.lane.b32.xlu0 %v1321_v51, %s3058_s0  ;;  %2806 = vmatpush1.bf16.msra.mxu1 %v3530_v14 }
0x15f1   :  { %2808 = vmatprep.subr.bf16.mxu1 %v3512_v3 }
0x15f4   :  { %1058 = vrot.lane.b32.xlu0 %v3397_v1, %s3058_s0 }
0x15f8   :  { %788 = vrot.lane.b32.xlu0 %v3345_v47, %s3058_s0 }
0x15fc   :  { %518 = vrot.lane.b32.xlu0 %v3293_v26, %s3058_s0 }
0x1600   :  { %1323 = vrot.lane.b32.xlu0 %v1320_v6, %s3059_s3 }
0x1662   :  { %v1329_v47 = vpop.permute.xlu0 %1328 }
0x1663   :  { %1331 = vst.msk [vmem:[#allocation3] sm:$0xff] %vm385_vm5, %v1329_v47 }
0x1666   :  { %v1059_v1 = vpop.permute.xlu0 %1058 }
0x1667   :  { %1061 = vst.msk [vmem:[#allocation3 + $0x10] sm:$0xff] %vm385_vm5, %v1059_v1 }
0x166a   :  { %v789_v36 = vpop.permute.xlu0 %788  ;;  %v1332_v60 = vld [vmem:[#allocation3] sm:$0xff] }
0x166b   :  { %791 = vst.msk [vmem:[#allocation3 + $0x20] sm:$0xff] %vm385_vm5, %v789_v36  ;;  %2655 = vmatmul.mubr.msk.f32.vlgmr.msra.gmra.mrb[24].mxu0 %vm1368_vm6, %v1332_v60 }
0x166c   :  { %921 = vst.msk [vmem:[#allocation3 + $0x20] sm:$0xff] %vm253_vm4, %v3374_v53  ;;  %2794 = vmatpush1.bf16.msra.mxu0 %v3516_v49  ;;  %1463 = vmatprep.mubr.f32.mxu0 %v3056_v0 }
0x166d   :  { %2796 = vmatprep.subr.bf16.mxu0 %v3525_v54 }
0x166e   :  { %v519_v26 = vpop.permute.xlu0 %518  ;;  %v1334_v61 = vld [vmem:[#allocation3 + $0x10] sm:$0xff] }
0x166f   :  { %521 = vst.msk [vmem:[#allocation3 + $0x30] sm:$0xff] %vm385_vm5, %v519_v26  ;;  %2656 = vmatmul.mubr.msk.f32.gmra.mrb[26].mxu0 %vm1368_vm6, %v1333_v46 }
0x1670   :  { %1191 = vst.msk [vmem:[#allocation3 + $0x30] sm:$0xff] %vm253_vm4, %v3422_v19  ;;  %1469 = vmatprep.mubr.f32.mxu0 %v3056_v0  ;;  %2798 = vmatpush1.bf16.msra.mxu0 %v3530_v14 }
0x1671   :  { %2848 = vmatprep.subr.bf16.mxu0 %v3512_v3 }
0x1672   :  { %v1324_v53 = vpop.permute.xlu0 %1323 }
0x1673   :  { %1326 = vst.msk [vmem:[#allocation3 + $0x38] sm:$0xff] %vm253_vm4, %v1324_v53  ;;  %2657 = vmatmul.mubr.msk.f32.gmra.mrb[28].mxu0 %vm1368_vm6, %v1334_v61  ;;  %v1336_v19 = vld [vmem:[#allocation3 + $0x20] sm:$0xff] }
0x1674   :  { %1475 = vmatprep.mubr.f32.mxu0 %v3056_v0 }
0x1677   :  { %2658 = vmatmul.mubr.msk.f32.gmra.mrb[30].mxu0 %vm1368_vm6, %v1335_v4  ;;  %v1338_v5 = vld [vmem:[#allocation3 + $0x30] sm:$0xff] }
0x1678   :  { %1481 = vmatprep.mubr.f32.mxu0 %v3056_v0 }
0x167a   :  { %v1339_v59 = vld [vmem:[#allocation3 + $0x38] sm:$0xff] }
0x167b   :  { %2659 = vmatmul.mubr.msk.f32.gmra.mrb[32].mxu0 %vm1368_vm6, %v1336_v19 }
0x167c   :  { %1487 = vmatprep.mubr.f32.mxu0 %v3056_v0 }
0x167f   :  { %2660 = vmatmul.mubr.msk.f32.gmra.mrb[34].mxu0 %vm1368_vm6, %v1337_v39 }
0x1680   :  { %1493 = vmatprep.mubr.f32.mxu0 %v3056_v0 }
0x1683   :  { %2661 = vmatmul.mubr.msk.f32.gmra.mrb[36].mxu0 %vm1368_vm6, %v1338_v5 }
0x1684   :  { %1499 = vmatprep.mubr.f32.mxu0 %v3056_v0 }
0x1687   :  { %2662 = vmatmul.mubr.msk.f32.gmra.mrb[38].mxu0 %vm1368_vm6, %v1339_v59 }
0x1688   :  { %1594 = vmatprep.mubr.f32.mxu0 %v3056_v0 }
0x168b   :  { %1595 = vmatmul.mubr.f32.vlgmr.msra.gmra.mrb[24].mxu0 %v3056_v0 }
0x168c   :  { %1599 = vmatprep.mubr.f32.mxu0 %v3056_v0  ;;  %2850 = vmatpush1.bf16.msra.mxu0 %v3516_v49 }
0x168d   :  { %2852 = vmatprep.subr.bf16.mxu0 %v3525_v54 }
0x168f   :  { %1600 = vmatmul.mubr.f32.gmra.mrb[40].mxu0 %v3056_v0 }
0x1690   :  { %2854 = vmatpush1.bf16.msra.mxu0 %v3530_v14  ;;  %2497 = vmatprep.mubr.f32.mxu0 %v3056_v0 }
0x1742   :  { %v1465_v43 = vpop.f32.mrb[26].mxu0 }
0x1743   :  { %v3579_v7 = vadd.f32 %v1465_v43, %v1361_v13  ;;  %v1467_v15 = vpop.f32.mrb[27].mxu0 }
0x1744   :  { %v3581_v16 = vadd.f32 %v1467_v15, %v1365_v27 }
0x1746   :  { %v1471_v11 = vpop.f32.mrb[28].mxu0 }
0x1747   :  { %v3583_v18 = vadd.f32 %v1471_v11, %v1361_v13  ;;  %v1473_v55 = vpop.f32.mrb[29].mxu0 }
0x1748   :  { %v3585_v20 = vadd.f32 %v1473_v55, %v1365_v27 }
0x174a   :  { %v1477_v21 = vpop.f32.mrb[30].mxu0 }
0x174b   :  { %v3587_v9 = vadd.f32 %v1477_v21, %v1361_v13  ;;  %v1479_v22 = vpop.f32.mrb[31].mxu0 }
0x174c   :  { %v3589_v31 = vadd.f32 %v1479_v22, %v1365_v27 }
0x174e   :  { %v1483_v28 = vpop.f32.mrb[32].mxu0 }
0x174f   :  { %v3591_v29 = vadd.f32 %v1483_v28, %v1361_v13  ;;  %v1485_v23 = vpop.f32.mrb[33].mxu0 }
0x1750   :  { %v3593_v8 = vadd.f32 %v1485_v23, %v1365_v27 }
0x1752   :  { %v1489_v24 = vpop.f32.mrb[34].mxu0 }
0x1753   :  { %v3595_v25 = vadd.f32 %v1489_v24, %v1361_v13  ;;  %v1491_v30 = vpop.f32.mrb[35].mxu0 }
0x1754   :  { %v3597_v44 = vadd.f32 %v1491_v30, %v1365_v27 }
0x1756   :  { %v1495_v32 = vpop.f32.mrb[36].mxu0 }
0x1757   :  { %v3599_v33 = vadd.f32 %v1495_v32, %v1361_v13  ;;  %v1497_v34 = vpop.f32.mrb[37].mxu0 }
0x1758   :  { %v3601_v35 = vadd.f32 %v1497_v34, %v1365_v27 }
0x175a   :  { %v1501_v37 = vpop.f32.mrb[38].mxu0 }
0x175b   :  { %v3603_v2 = vadd.f32 %v1501_v37, %v1361_v13  ;;  %v1503_v63 = vpop.f32.mrb[39].mxu0 }
0x175c   :  { %v1504_v40 = vadd.f32 %v1503_v63, %v1365_v27 }
0x175e   :  { %v1596_v12 = vpop.f32.mrb[24].mxu0 }
0x175f   :  { %v2867_v17 = vadd.f32 %v1596_v12, %v1361_v13  ;;  %v1598_v38 = vpop.f32.mrb[25].mxu0 }
0x1761   :  { %2944 = vtanh.f32 %v2867_v17 }
0x1762   :  { %v1601_v41 = vpop.f32.mrb[40].mxu0 }
0x1763   :  { %v1602_v42 = vpop.f32.mrb[41].mxu0 }
0x1764   :  { %v1608_v45 = vadd.f32 %v1602_v42, %v1504_v40 }
0x1766   :  { %2946 = vtanh.f32 %v1608_v45 }
0x176b   :  { %v2945_v48 = vpop.eup %2944 }
0x176c   :  { %v1611_v51 = vmul.f32 %v2945_v48, %v3241_v57 }
0x176e   :  { %v1613_v50 = vadd.f32 %v1611_v51, %v3245_v62 }
0x1770   :  { %1619 = vrot.lane.b32.xlu1 %v1613_v50, %s3058_s0  ;;  %v1615_v58 = vmul.f32 0.0, %v1613_v50  ;;  %v2947_v1 = vpop.eup %2946 }
0x1771   :  { %v1612_v36 = vmul.f32 %v2947_v1, %v3241_v57 }
0x1773   :  { %v1614_v26 = vadd.f32 %v1612_v36, %v3245_v62 }
0x1775   :  { %v1616_v39 = vmul.f32 0.0, %v1614_v26 }
0x17e2   :  { %v1620_v52 = vpop.permute.xlu1 %1619 }
0x17e3   :  { %v1625_v56 = vmul.f32 %v1620_v52, %v1613_v50 }
0x17e5   :  { %1629 = vrot.lane.b32.xlu0 %v1625_v56, %s3059_s3 }
0x1857   :  { %v1630_v6 = vpop.permute.xlu0 %1629 }
0x1858   :  { %v1635_v47 = vadd.f32 %v1630_v6, %v1615_v58 }
0x185a   :  { %2948 = vtanh.f32 %v1635_v47 }
0x1864   :  { %v2949_v60 = vpop.eup %2948 }
0x1865   :  { %1641 = vrot.lane.b32.xlu1 %v2949_v60, %s3058_s0 }
0x1869   :  { %1621 = vrot.lane.b32.xlu1 %v1614_v26, %s3058_s0 }
0x18d7   :  { %v1642_v46 = vpop.permute.xlu1 %1641 }
0x18d8   :  { %v1647_v53 = vmul.f32 %v1642_v46, %v1613_v50 }
0x18da   :  { %1651 = vrot.lane.b32.xlu0 %v1647_v53, %s3059_s3 }
0x18db   :  { %v1622_v61 = vpop.permute.xlu1 %1621 }
0x18dc   :  { %v1626_v4 = vmul.f32 %v1622_v61, %v1614_v26 }
0x18de   :  { %1631 = vrot.lane.b32.xlu1 %v1626_v4, %s3059_s3 }
0x194c   :  { %v1652_v19 = vpop.permute.xlu0 %1651 }
0x194d   :  { %2663 = vmatmul.mubr.msk.f32.vlgmr.msra.gmra.mrb[24].mxu1 %vm253_vm4, %v1652_v19 }
0x194e   :  { %1728 = vmatprep.mubr.f32.mxu1 %v3056_v0  ;;  %2810 = vmatpush1.bf16.msra.mxu1 %v3516_v49 }
0x194f   :  { %2812 = vmatprep.subr.bf16.mxu1 %v3525_v54 }
0x1950   :  { %v1632_v5 = vpop.permute.xlu1 %1631 }
0x1951   :  { %v1636_v59 = vadd.f32 %v1632_v5, %v1616_v39 }
0x1952   :  { %2814 = vmatpush1.bf16.msra.mxu1 %v3530_v14 }
0x1953   :  { %2950 = vtanh.f32 %v1636_v59  ;;  %2816 = vmatprep.subr.bf16.mxu1 %v3512_v3 }
0x195d   :  { %v2951_v10 = vpop.eup %2950 }
0x195e   :  { %1643 = vrot.lane.b32.xlu1 %v2951_v10, %s3058_s0 }
0x19d0   :  { %v1644_v13 = vpop.permute.xlu1 %1643 }
0x19d1   :  { %v3622_v27 = vmul.f32 %v1644_v13, %v1614_v26 }
0x19d3   :  { %1653 = vrot.lane.b32.xlu1 %v3622_v27, %s3059_s3 }
0x1a20   :  { %v1725_v43 = vpop.f32.mrb[24].mxu1 }
0x1a21   :  { %v1736_v15 = vadd.f32 %v1725_v43, %v3579_v7  ;;  %v1727_v11 = vpop.f32.mrb[25].mxu1 }
0x1a23   :  { %2952 = vtanh.f32 %v1736_v15 }
0x1a2d   :  { %v2953_v55 = vpop.eup %2952 }
0x1a2e   :  { %v1740_v21 = vmul.f32 %v2953_v55, %v3241_v57 }
0x1a30   :  { %v1742_v22 = vadd.f32 %v1740_v21, %v3245_v62 }
0x1a32   :  { %1748 = vrot.lane.b32.xlu0 %v1742_v22, %s3058_s0  ;;  %v1744_v30 = vmul.f32 %v1742_v22, %v1635_v47 }
0x1a45   :  { %v1654_v28 = vpop.permute.xlu1 %1653 }
0x1a46   :  { %2664 = vmatmul.mubr.msk.f32.gmra.mrb[26].mxu1 %vm253_vm4, %v1654_v28 }
0x1a47   :  { %1852 = vmatprep.mubr.f32.mxu1 %v3056_v0 }
0x1aa4   :  { %v1749_v23 = vpop.permute.xlu0 %1748 }
0x1aa5   :  { %v1754_v24 = vmul.f32 %v1749_v23, %v1742_v22 }
0x1aa7   :  { %1758 = vrot.lane.b32.xlu0 %v1754_v24, %s3059_s3 }
0x1b19   :  { %v1730_v7 = vpop.f32.mrb[26].mxu1  ;;  %v1759_v32 = vpop.permute.xlu0 %1758 }
0x1b1a   :  { %v1764_v34 = vadd.f32 %v1759_v32, %v1744_v30  ;;  %v1731_v37 = vpop.f32.mrb[27].mxu1 }
0x1b1b   :  { %v1737_v63 = vadd.f32 %v1731_v37, %v3601_v35 }
0x1b1c   :  { %2954 = vtanh.f32 %v1764_v34 }
0x1b1d   :  { %2956 = vtanh.f32 %v1737_v63 }
0x1b26   :  { %v2955_v12 = vpop.eup %2954 }
0x1b27   :  { %v2957_v17 = vpop.eup %2956  ;;  %1770 = vrot.lane.b32.xlu0 %v2955_v12, %s3058_s0 }
0x1b28   :  { %v1741_v38 = vmul.f32 %v2957_v17, %v3241_v57 }
0x1b2a   :  { %v1743_v40 = vadd.f32 %v1741_v38, %v3245_v62 }
0x1b2c   :  { %1750 = vrot.lane.b32.xlu1 %v1743_v40, %s3058_s0  ;;  %v1745_v51 = vmul.f32 %v1743_v40, %v1636_v59 }
0x1b99   :  { %v1771_v41 = vpop.permute.xlu0 %1770 }
0x1b9a   :  { %v1776_v42 = vmul.f32 %v1771_v41, %v1742_v22 }
0x1b9c   :  { %1780 = vrot.lane.b32.xlu0 %v1776_v42, %s3059_s3 }
0x1b9e   :  { %v1751_v45 = vpop.permute.xlu1 %1750 }
0x1b9f   :  { %v1755_v48 = vmul.f32 %v1751_v45, %v1743_v40 }
0x1ba1   :  { %1760 = vrot.lane.b32.xlu1 %v1755_v48, %s3059_s3 }
0x1c0e   :  { %v1781_v35 = vpop.permute.xlu0 %1780 }
0x1c0f   :  { %2665 = vmatmul.mubr.msk.f32.vlgmr.msra.gmra.mrb[28].mxu1 %vm253_vm4, %v1781_v35 }
0x1c10   :  { %1857 = vmatprep.mubr.f32.mxu1 %v3056_v0  ;;  %2818 = vmatpush1.bf16.msra.mxu1 %v3516_v49 }
0x1c11   :  { %2820 = vmatprep.subr.bf16.mxu1 %v3525_v54 }
0x1c13   :  { %v1761_v50 = vpop.permute.xlu1 %1760 }
0x1c14   :  { %v1765_v52 = vadd.f32 %v1761_v50, %v1745_v51  ;;  %2822 = vmatpush1.bf16.msra.mxu1 %v3530_v14 }
0x1c15   :  { %2824 = vmatprep.subr.bf16.mxu1 %v3512_v3 }
0x1c16   :  { %2958 = vtanh.f32 %v1765_v52 }
0x1c20   :  { %v2959_v56 = vpop.eup %2958 }
0x1c21   :  { %1772 = vrot.lane.b32.xlu1 %v2959_v56, %s3058_s0 }
0x1c93   :  { %v1773_v58 = vpop.permute.xlu1 %1772 }
0x1c94   :  { %v1777_v6 = vmul.f32 %v1773_v58, %v1743_v40 }
0x1c96   :  { %1782 = vrot.lane.b32.xlu1 %v1777_v6, %s3059_s3 }
0x1ce2   :  { %v1854_v47 = vpop.f32.mrb[28].mxu1 }
0x1ce3   :  { %v1865_v1 = vadd.f32 %v1854_v47, %v3583_v18  ;;  %v1856_v36 = vpop.f32.mrb[29].mxu1 }
0x1ce5   :  { %2960 = vtanh.f32 %v1865_v1 }
0x1cef   :  { %v2961_v60 = vpop.eup %2960 }
0x1cf0   :  { %v1869_v26 = vmul.f32 %v2961_v60, %v3241_v57 }
0x1cf2   :  { %v1871_v46 = vadd.f32 %v1869_v26, %v3245_v62 }
0x1cf4   :  { %1877 = vrot.lane.b32.xlu0 %v1871_v46, %s3058_s0  ;;  %v1873_v19 = vmul.f32 %v1871_v46, %v1764_v34 }
0x1d08   :  { %v1783_v53 = vpop.permute.xlu1 %1782 }
0x1d09   :  { %2666 = vmatmul.mubr.msk.f32.gmra.mrb[30].mxu1 %vm253_vm4, %v1783_v53 }
0x1d0a   :  { %1981 = vmatprep.mubr.f32.mxu1 %v3056_v0 }
0x1d66   :  { %v1878_v61 = vpop.permute.xlu0 %1877 }
0x1d67   :  { %v1883_v4 = vmul.f32 %v1878_v61, %v1871_v46 }
0x1d69   :  { %1887 = vrot.lane.b32.xlu0 %v1883_v4, %s3059_s3 }
0x1ddb   :  { %v1888_v18 = vpop.permute.xlu0 %1887 }
0x1ddc   :  { %v1893_v39 = vadd.f32 %v1888_v18, %v1873_v19  ;;  %v1859_v5 = vpop.f32.mrb[30].mxu1 }
0x1ddd   :  { %v1860_v59 = vpop.f32.mrb[31].mxu1 }
0x1dde   :  { %2962 = vtanh.f32 %v1893_v39  ;;  %v1866_v10 = vadd.f32 %v1860_v59, %v3597_v44 }
0x1de0   :  { %2964 = vtanh.f32 %v1866_v10 }
0x1de8   :  { %v2963_v13 = vpop.eup %2962 }
0x1de9   :  { %1899 = vrot.lane.b32.xlu0 %v2963_v13, %s3058_s0 }
0x1dea   :  { %v2965_v43 = vpop.eup %2964 }
0x1deb   :  { %v1870_v15 = vmul.f32 %v2965_v43, %v3241_v57 }
0x1ded   :  { %v1872_v11 = vadd.f32 %v1870_v15, %v3245_v62 }
0x1def   :  { %1879 = vrot.lane.b32.xlu1 %v1872_v11, %s3058_s0  ;;  %v1874_v23 = vmul.f32 %v1872_v11, %v1765_v52 }
0x1e5b   :  { %v1900_v55 = vpop.permute.xlu0 %1899 }
0x1e5c   :  { %v1905_v21 = vmul.f32 %v1900_v55, %v1871_v46 }
0x1e5e   :  { %1909 = vrot.lane.b32.xlu0 %v1905_v21, %s3059_s3 }
0x1e61   :  { %v1880_v22 = vpop.permute.xlu1 %1879 }
0x1e62   :  { %v1884_v28 = vmul.f32 %v1880_v22, %v1872_v11 }
0x1e64   :  { %1889 = vrot.lane.b32.xlu1 %v1884_v28, %s3059_s3 }
0x1ed0   :  { %v1910_v44 = vpop.permute.xlu0 %1909 }
0x1ed1   :  { %2667 = vmatmul.mubr.msk.f32.vlgmr.msra.gmra.mrb[32].mxu1 %vm253_vm4, %v1910_v44 }
0x1ed2   :  { %1986 = vmatprep.mubr.f32.mxu1 %v3056_v0  ;;  %2826 = vmatpush1.bf16.msra.mxu1 %v3516_v49 }
0x1ed3   :  { %2828 = vmatprep.subr.bf16.mxu1 %v3525_v54 }
0x1ed6   :  { %v1890_v24 = vpop.permute.xlu1 %1889  ;;  %2830 = vmatpush1.bf16.msra.mxu1 %v3530_v14 }
0x1ed7   :  { %v1894_v30 = vadd.f32 %v1890_v24, %v1874_v23  ;;  %2832 = vmatprep.subr.bf16.mxu1 %v3512_v3 }
0x1ed9   :  { %2966 = vtanh.f32 %v1894_v30 }
0x1ee3   :  { %v2967_v7 = vpop.eup %2966 }
0x1ee4   :  { %1901 = vrot.lane.b32.xlu1 %v2967_v7, %s3058_s0 }
0x1f56   :  { %v1902_v32 = vpop.permute.xlu1 %1901 }
0x1f57   :  { %v1906_v34 = vmul.f32 %v1902_v32, %v1872_v11 }
0x1f59   :  { %1911 = vrot.lane.b32.xlu1 %v1906_v34, %s3059_s3 }
0x1fa4   :  { %v1983_v37 = vpop.f32.mrb[32].mxu1 }
0x1fa5   :  { %v1994_v63 = vadd.f32 %v1983_v37, %v3587_v9  ;;  %v1985_v12 = vpop.f32.mrb[33].mxu1 }
0x1fa7   :  { %2968 = vtanh.f32 %v1994_v63 }
0x1fb1   :  { %v2969_v17 = vpop.eup %2968 }
0x1fb2   :  { %v1998_v38 = vmul.f32 %v2969_v17, %v3241_v57 }
0x1fb4   :  { %v2000_v40 = vadd.f32 %v1998_v38, %v3245_v62 }
0x1fb6   :  { %2006 = vrot.lane.b32.xlu0 %v2000_v40, %s3058_s0  ;;  %v2002_v48 = vmul.f32 %v2000_v40, %v1893_v39 }
0x1fcb   :  { %v1912_v41 = vpop.permute.xlu1 %1911 }
0x1fcc   :  { %2668 = vmatmul.mubr.msk.f32.gmra.mrb[34].mxu1 %vm253_vm4, %v1912_v41 }
0x1fcd   :  { %2110 = vmatprep.mubr.f32.mxu1 %v3056_v0 }
0x2028   :  { %v2007_v42 = vpop.permute.xlu0 %2006 }
0x2029   :  { %v2012_v45 = vmul.f32 %v2007_v42, %v2000_v40 }
0x202b   :  { %2016 = vrot.lane.b32.xlu0 %v2012_v45, %s3059_s3 }
0x209d   :  { %v2017_v9 = vpop.permute.xlu0 %2016 }
0x209e   :  { %v2022_v35 = vadd.f32 %v2017_v9, %v2002_v48 }
0x209f   :  { %v1988_v51 = vpop.f32.mrb[34].mxu1 }
0x20a0   :  { %2970 = vtanh.f32 %v2022_v35  ;;  %v1989_v50 = vpop.f32.mrb[35].mxu1 }
0x20a1   :  { %v1995_v52 = vadd.f32 %v1989_v50, %v3593_v8 }
0x20a3   :  { %2972 = vtanh.f32 %v1995_v52 }
0x20aa   :  { %v2971_v56 = vpop.eup %2970 }
0x20ab   :  { %2028 = vrot.lane.b32.xlu0 %v2971_v56, %s3058_s0 }
0x20ad   :  { %v2973_v58 = vpop.eup %2972 }
0x20ae   :  { %v1999_v6 = vmul.f32 %v2973_v58, %v3241_v57 }
0x20b0   :  { %v2001_v47 = vadd.f32 %v1999_v6, %v3245_v62 }
0x20b2   :  { %2008 = vrot.lane.b32.xlu1 %v2001_v47, %s3058_s0  ;;  %v2003_v46 = vmul.f32 %v2001_v47, %v1894_v30 }
0x211d   :  { %v2029_v1 = vpop.permute.xlu0 %2028 }
0x211e   :  { %v2034_v36 = vmul.f32 %v2029_v1, %v2000_v40 }
0x2120   :  { %2038 = vrot.lane.b32.xlu0 %v2034_v36, %s3059_s3 }
0x2124   :  { %v2009_v60 = vpop.permute.xlu1 %2008 }
0x2125   :  { %v2013_v26 = vmul.f32 %v2009_v60, %v2001_v47 }
0x2127   :  { %2018 = vrot.lane.b32.xlu1 %v2013_v26, %s3059_s3 }
0x2192   :  { %v2039_v8 = vpop.permute.xlu0 %2038 }
0x2193   :  { %2669 = vmatmul.mubr.msk.f32.vlgmr.msra.gmra.mrb[36].mxu1 %vm253_vm4, %v2039_v8 }
0x2194   :  { %2115 = vmatprep.mubr.f32.mxu1 %v3056_v0  ;;  %2834 = vmatpush1.bf16.msra.mxu1 %v3516_v49 }
0x2195   :  { %2836 = vmatprep.subr.bf16.mxu1 %v3525_v54 }
0x2198   :  { %2838 = vmatpush1.bf16.msra.mxu1 %v3530_v14 }
0x2199   :  { %v2019_v53 = vpop.permute.xlu1 %2018  ;;  %2840 = vmatprep.subr.bf16.mxu1 %v3512_v3 }
0x219a   :  { %v2023_v61 = vadd.f32 %v2019_v53, %v2003_v46 }
0x219c   :  { %2974 = vtanh.f32 %v2023_v61 }
0x21a6   :  { %v2975_v4 = vpop.eup %2974 }
0x21a7   :  { %2030 = vrot.lane.b32.xlu1 %v2975_v4, %s3058_s0 }
0x2219   :  { %v2031_v19 = vpop.permute.xlu1 %2030 }
0x221a   :  { %v2035_v18 = vmul.f32 %v2031_v19, %v2001_v47 }
0x221c   :  { %2040 = vrot.lane.b32.xlu1 %v2035_v18, %s3059_s3 }
0x2266   :  { %v2112_v39 = vpop.f32.mrb[36].mxu1 }
0x2267   :  { %v2123_v5 = vadd.f32 %v2112_v39, %v3591_v29  ;;  %v2114_v59 = vpop.f32.mrb[37].mxu1 }
0x2269   :  { %2976 = vtanh.f32 %v2123_v5 }
0x2273   :  { %v2977_v10 = vpop.eup %2976 }
0x2274   :  { %v2127_v13 = vmul.f32 %v2977_v10, %v3241_v57 }
0x2276   :  { %v2129_v43 = vadd.f32 %v2127_v13, %v3245_v62 }
0x2278   :  { %2135 = vrot.lane.b32.xlu0 %v2129_v43, %s3058_s0  ;;  %v2131_v55 = vmul.f32 %v2129_v43, %v2022_v35 }
0x228e   :  { %v2041_v3 = vpop.permute.xlu1 %2040 }
0x228f   :  { %2670 = vmatmul.mubr.msk.f32.gmra.mrb[38].mxu1 %vm253_vm4, %v2041_v3 }
0x2290   :  { %2239 = vmatprep.mubr.f32.mxu1 %v3056_v0 }
0x22ea   :  { %v2136_v15 = vpop.permute.xlu0 %2135 }
0x22eb   :  { %v2141_v11 = vmul.f32 %v2136_v15, %v2129_v43 }
0x22ed   :  { %2145 = vrot.lane.b32.xlu0 %v2141_v11, %s3059_s3 }
0x235f   :  { %v2146_v29 = vpop.permute.xlu0 %2145 }
0x2360   :  { %v2151_v21 = vadd.f32 %v2146_v29, %v2131_v55 }
0x2362   :  { %2978 = vtanh.f32 %v2151_v21  ;;  %v2117_v22 = vpop.f32.mrb[38].mxu1 }
0x2363   :  { %v2118_v28 = vpop.f32.mrb[39].mxu1 }
0x2364   :  { %v2124_v44 = vadd.f32 %v2118_v28, %v3589_v31 }
0x2366   :  { %2980 = vtanh.f32 %v2124_v44 }
0x236c   :  { %v2979_v23 = vpop.eup %2978 }
0x236d   :  { %2157 = vrot.lane.b32.xlu0 %v2979_v23, %s3058_s0 }
0x2370   :  { %v2981_v24 = vpop.eup %2980 }
0x2371   :  { %v2128_v30 = vmul.f32 %v2981_v24, %v3241_v57 }
0x2373   :  { %v2130_v7 = vadd.f32 %v2128_v30, %v3245_v62 }
0x2375   :  { %2137 = vrot.lane.b32.xlu1 %v2130_v7, %s3058_s0  ;;  %v2132_v12 = vmul.f32 %v2130_v7, %v2023_v61 }
0x23df   :  { %v2158_v32 = vpop.permute.xlu0 %2157 }
0x23e0   :  { %v2163_v34 = vmul.f32 %v2158_v32, %v2129_v43 }
0x23e2   :  { %2167 = vrot.lane.b32.xlu0 %v2163_v34, %s3059_s3 }
0x23e7   :  { %v2138_v37 = vpop.permute.xlu1 %2137 }
0x23e8   :  { %v2142_v63 = vmul.f32 %v2138_v37, %v2130_v7 }
0x23ea   :  { %2147 = vrot.lane.b32.xlu1 %v2142_v63, %s3059_s3 }
0x2454   :  { %v2168_v31 = vpop.permute.xlu0 %2167 }
0x2455   :  { %2671 = vmatmul.mubr.msk.f32.vlgmr.msra.gmra.mrb[40].mxu1 %vm253_vm4, %v2168_v31 }
0x2456   :  { %2244 = vmatprep.mubr.f32.mxu1 %v3056_v0  ;;  %2842 = vmatpush1.bf16.msra.mxu1 %v3516_v49 }
0x2457   :  { %2844 = vmatprep.subr.bf16.mxu1 %v3525_v54 }
0x245a   :  { %2846 = vmatpush1.bf16.msra.mxu1 %v3530_v14 }
0x245c   :  { %v2148_v17 = vpop.permute.xlu1 %2147 }
0x245d   :  { %v2152_v38 = vadd.f32 %v2148_v17, %v2132_v12 }
0x245f   :  { %2982 = vtanh.f32 %v2152_v38 }
0x2469   :  { %v2983_v40 = vpop.eup %2982 }
0x246a   :  { %2159 = vrot.lane.b32.xlu1 %v2983_v40, %s3058_s0 }
0x24dc   :  { %v2160_v41 = vpop.permute.xlu1 %2159 }
0x24dd   :  { %v2164_v42 = vmul.f32 %v2160_v41, %v2130_v7 }
0x24df   :  { %2169 = vrot.lane.b32.xlu1 %v2164_v42, %s3059_s3 }
0x2528   :  { %v2241_v45 = vpop.f32.mrb[40].mxu1 }
0x2529   :  { %v2252_v48 = vadd.f32 %v2241_v45, %v3595_v25  ;;  %v2243_v9 = vpop.f32.mrb[41].mxu1 }
0x252b   :  { %2984 = vtanh.f32 %v2252_v48 }
0x2535   :  { %v2985_v49 = vpop.eup %2984 }
0x2536   :  { %v2256_v54 = vmul.f32 %v2985_v49, %v3241_v57 }
0x2538   :  { %v2258_v14 = vadd.f32 %v2256_v54, %v3245_v62 }
0x253a   :  { %2264 = vrot.lane.b32.xlu0 %v2258_v14, %s3058_s0  ;;  %v2260_v52 = vmul.f32 %v2258_v14, %v2151_v21 }
0x2551   :  { %v2170_v35 = vpop.permute.xlu1 %2169 }
0x2552   :  { %2672 = vmatmul.mubr.msk.f32.gmra.mrb[42].mxu1 %vm253_vm4, %v2170_v35 }
0x2553   :  { %2368 = vmatprep.mubr.f32.mxu1 %v3056_v0 }
0x25ac   :  { %v2265_v51 = vpop.permute.xlu0 %2264 }
0x25ad   :  { %v2270_v50 = vmul.f32 %v2265_v51, %v2258_v14 }
0x25af   :  { %2274 = vrot.lane.b32.xlu0 %v2270_v50, %s3059_s3 }
0x2621   :  { %v2275_v25 = vpop.permute.xlu0 %2274 }
0x2622   :  { %v2280_v56 = vadd.f32 %v2275_v25, %v2260_v52 }
0x2624   :  { %2986 = vtanh.f32 %v2280_v56 }
0x2625   :  { %v2246_v58 = vpop.f32.mrb[42].mxu1 }
0x2626   :  { %v2247_v6 = vpop.f32.mrb[43].mxu1 }
0x2627   :  { %v2253_v47 = vadd.f32 %v2247_v6, %v3585_v20  ;;  %v2541_v6 = vld [vmem:[%s3798_s7 + $0x20] sm:$0xff] }
0x2629   :  { %2988 = vtanh.f32 %v2253_v47  ;;  %v2542_v47 = vld [vmem:[%s3798_s7 + $0x28] sm:$0xff] }
0x262e   :  { %v2987_v1 = vpop.eup %2986 }
0x262f   :  { %2286 = vrot.lane.b32.xlu0 %v2987_v1, %s3058_s0 }
0x2633   :  { %v2989_v36 = vpop.eup %2988 }
0x2634   :  { %v2257_v8 = vmul.f32 %v2989_v36, %v3241_v57  ;;  %v2862_v36 = vpack.c.bf16 %v2542_v47, %v2541_v6 }
0x2636   :  { %v2259_v46 = vadd.f32 %v2257_v8, %v3245_v62 }
0x2638   :  { %v2261_v4 = vmul.f32 %v2259_v46, %v2152_v38 }
0x26a1   :  { %v2287_v60 = vpop.permute.xlu0 %2286 }
0x26a2   :  { %v2292_v26 = vmul.f32 %v2287_v60, %v2258_v14  ;;  %v2543_v60 = vld [vmem:[%s3798_s7 + $0x30] sm:$0xff] }
0x26a4   :  { %2296 = vrot.lane.b32.xlu0 %v2292_v26, %s3059_s3  ;;  %v2544_v26 = vld [vmem:[%s3798_s7 + $0x38] sm:$0xff] }
0x26a5   :  { %v2865_v8 = vpack.c.bf16 %v2544_v26, %v2543_v60 }
0x26a8   :  { %2266 = vrot.lane.b32.xlu0 %v2259_v46, %s3058_s0 }
0x2716   :  { %v2297_v53 = vpop.permute.xlu0 %2296 }
0x2717   :  { %2673 = vmatmul.mubr.msk.f32.vlgmr.msra.gmra.mrb[44].mxu1 %vm253_vm4, %v2297_v53 }
0x2718   :  { %2373 = vmatprep.mubr.f32.mxu1 %v3056_v0 }
0x271a   :  { %v2267_v20 = vpop.permute.xlu0 %2266 }
0x271b   :  { %v2271_v61 = vmul.f32 %v2267_v20, %v2259_v46 }
0x271d   :  { %2276 = vrot.lane.b32.xlu0 %v2271_v61, %s3059_s3 }
0x278f   :  { %v2277_v19 = vpop.permute.xlu0 %2276 }
0x2790   :  { %v2281_v18 = vadd.f32 %v2277_v19, %v2261_v4 }
0x2792   :  { %2990 = vtanh.f32 %v2281_v18 }
0x279c   :  { %v2991_v39 = vpop.eup %2990 }
0x279d   :  { %2288 = vrot.lane.b32.xlu0 %v2991_v39, %s3058_s0 }
0x27ea   :  { %v2370_v5 = vpop.f32.mrb[44].mxu1 }
0x27eb   :  { %v2381_v59 = vadd.f32 %v2370_v5, %v3599_v33  ;;  %v2372_v10 = vpop.f32.mrb[45].mxu1 }
0x27ed   :  { %2992 = vtanh.f32 %v2381_v59 }
0x27f7   :  { %v2993_v13 = vpop.eup %2992 }
0x27f8   :  { %v2385_v43 = vmul.f32 %v2993_v13, %v3241_v57 }
0x27fa   :  { %v2387_v3 = vadd.f32 %v2385_v43, %v3245_v62 }
0x27fc   :  { %2393 = vrot.lane.b32.xlu1 %v2387_v3, %s3058_s0  ;;  %v2389_v33 = vmul.f32 %v2387_v3, %v2280_v56  ;;  %v2540_v56 = vld [vmem:[%s3798_s7 + $0x18] sm:$0xff] }
0x280f   :  { %v2289_v15 = vpop.permute.xlu0 %2288 }
0x2810   :  { %v2293_v11 = vmul.f32 %v2289_v15, %v2259_v46 }
0x2812   :  { %2298 = vrot.lane.b32.xlu0 %v2293_v11, %s3059_s3 }
0x286e   :  { %v2394_v55 = vpop.permute.xlu1 %2393 }
0x286f   :  { %v2399_v29 = vmul.f32 %v2394_v55, %v2387_v3 }
0x2871   :  { %2403 = vrot.lane.b32.xlu1 %v2399_v29, %s3059_s3 }
0x2884   :  { %v2299_v21 = vpop.permute.xlu0 %2298 }
0x2885   :  { %2674 = vmatmul.mubr.msk.f32.gmra.mrb[46].mxu1 %vm253_vm4, %v2299_v21 }
0x2886   :  { %2704 = vmatprep.mubr.msk.f32.mxu1 %vm3061_vm7, %v3056_v0 }
0x28e3   :  { %v2404_v22 = vpop.permute.xlu1 %2403 }
0x28e4   :  { %v2409_v28 = vadd.f32 %v2404_v22, %v2389_v33 }
0x28e6   :  { %2994 = vtanh.f32 %v2409_v28 }
0x28f0   :  { %v2995_v44 = vpop.eup %2994 }
0x28f1   :  { %2415 = vrot.lane.b32.xlu1 %v2995_v44, %s3058_s0 }
0x2958   :  { %v2375_v23 = vpop.f32.mrb[46].mxu1 }
0x2959   :  { %v2376_v24 = vpop.f32.mrb[47].mxu1 }
0x295a   :  { %v2382_v30 = vadd.f32 %v2376_v24, %v3581_v16 }
0x295c   :  { %2996 = vtanh.f32 %v2382_v30 }
0x2963   :  { %v2416_v7 = vpop.permute.xlu1 %2415 }
0x2964   :  { %v2421_v32 = vmul.f32 %v2416_v7, %v2387_v3 }
0x2966   :  { %v2997_v34 = vpop.eup %2996  ;;  %2425 = vrot.lane.b32.xlu1 %v2421_v32, %s3059_s3 }
0x2967   :  { %v2386_v37 = vmul.f32 %v2997_v34, %v3241_v57 }
0x2969   :  { %v2388_v63 = vadd.f32 %v2386_v37, %v3245_v62 }
0x296b   :  { %2395 = vrot.lane.b32.xlu0 %v2388_v63, %s3058_s0  ;;  %v2390_v16 = vmul.f32 %v2388_v63, %v2281_v18 }
0x29d8   :  { %v2426_v31 = vpop.permute.xlu1 %2425 }
0x29d9   :  { %2675 = vmatmul.mubr.msk.f32.vlgmr.msra.gmra.mrb[42].mxu0 %vm253_vm4, %v2426_v31 }
0x29da   :  { %2502 = vmatprep.mubr.f32.mxu0 %v3056_v0  ;;  %v2677_v0 = vld [vmem:[%s3799_s8] ss:$0 sm:$0xff] }
0x29dd   :  { %v2396_v12 = vpop.permute.xlu0 %2395 }
0x29de   :  { %v2400_v17 = vmul.f32 %v2396_v12, %v2388_v63 }
0x29e0   :  { %2405 = vrot.lane.b32.xlu0 %v2400_v17, %s3059_s3 }
0x2a52   :  { %v2406_v38 = vpop.permute.xlu0 %2405 }
0x2a53   :  { %v2410_v40 = vadd.f32 %v2406_v38, %v2390_v16 }
0x2a55   :  { %2998 = vtanh.f32 %v2410_v40 }
0x2a5f   :  { %v2999_v41 = vpop.eup %2998 }
0x2a60   :  { %2417 = vrot.lane.b32.xlu0 %v2999_v41, %s3058_s0 }
0x2a64   :  { %2533 = vrot.lane.b32.xlu0 %v3622_v27, %s3058_s0  ;;  %v3060_v27 = vmov 0.0|0.0  }
0x2a65   :  { %2855 = vmatprep.subr.bf16.mxu1 %v3060_v27 }
0x2aac   :  { %v2499_v42 = vpop.f32.mrb[42].mxu0 }
0x2aad   :  { %v2508_v45 = vadd.f32 %v2499_v42, %v3603_v2  ;;  %v2501_v48 = vpop.f32.mrb[43].mxu0  ;;  %v2537_v2 = vld [vmem:[%s3798_s7] sm:$0xff] }
0x2aaf   :  { %3000 = vtanh.f32 %v2508_v45 }
0x2ab9   :  { %v3001_v9 = vpop.eup %3000 }
0x2aba   :  { %v2510_v49 = vmul.f32 %v3001_v9, %v3241_v57  ;;  %v2538_v57 = vld [vmem:[%s3798_s7 + $0x8] sm:$0xff] }
0x2abb   :  { %v2856_v25 = vpack.c.bf16 %v2538_v57, %v2537_v2 }
0x2abc   :  { %v2511_v54 = vadd.f32 %v2510_v49, %v3245_v62  ;;  %v2539_v62 = vld [vmem:[%s3798_s7 + $0x10] sm:$0xff] }
0x2abd   :  { %2857 = vmatpush3.bf16.msra.mxu1 %v2856_v25  ;;  %v2859_v58 = vpack.c.bf16 %v2540_v56, %v2539_v62 }
0x2abe   :  { %2514 = vrot.lane.b32.xlu1 %v2511_v54, %s3058_s0  ;;  %v2512_v51 = vmul.f32 %v2511_v54, %v2409_v28  ;;  %2858 = vmatprep.subr.bf16.mxu1 %v3060_v27 }
0x2ac1   :  { %2860 = vmatpush3.bf16.msra.mxu1 %v2859_v58 }
0x2ac2   :  { %2861 = vmatprep.subr.bf16.mxu1 %v3060_v27 }
0x2ac5   :  { %2863 = vmatpush3.bf16.msra.mxu1 %v2862_v36 }
0x2ac6   :  { %2864 = vmatprep.subr.bf16.mxu1 %v3060_v27 }
0x2ac9   :  { %2866 = vmatpush3.bf16.msra.mxu1 %v2865_v8 }
0x2ad2   :  { %v2418_v20 = vpop.permute.xlu0 %2417 }
0x2ad3   :  { %v2422_v61 = vmul.f32 %v2418_v20, %v2388_v63 }
0x2ad6   :  { %v2534_v4 = vpop.permute.xlu0 %2533 }
0x2b30   :  { %v2515_v14 = vpop.permute.xlu1 %2514 }
0x2b31   :  { %v2517_v35 = vmul.f32 %v2515_v14, %v2511_v54 }
0x2b33   :  { %2519 = vrot.lane.b32.xlu1 %v2517_v35, %s3059_s3 }
0x2ba5   :  { %v2520_v50 = vpop.permute.xlu1 %2519 }
0x2ba6   :  { %v2522_v52 = vadd.f32 %v2520_v50, %v2512_v51 }
0x2ba8   :  { %3002 = vtanh.f32 %v2522_v52 }
0x2bb2   :  { %v3003_v1 = vpop.eup %3002 }
0x2bb3   :  { %2525 = vrot.lane.b32.xlu1 %v3003_v1, %s3058_s0 }
0x2c25   :  { %v2526_v46 = vpop.permute.xlu1 %2525 }
0x2c26   :  { %v2528_v53 = vmul.f32 %v2526_v46, %v2511_v54 }
0x2c28   :  { %2530 = vrot.lane.b32.xlu1 %v2528_v53, %s3059_s3 }
0x2c2c   :  { %2427 = vrot.lane.b32.xlu1 %v2422_v61, %s3059_s3 }
0x2c9a   :  { %v2531_v19 = vpop.permute.xlu1 %2530 }
0x2c9b   :  { %v2536_v18 = vsel %vm253_vm4, %v2531_v19, %v2534_v4 }
0x2c9c   :  { %2705 = vmatmul.mubr.msk.f32.vlgmr.msra.gmra.mrb[48].mxu1 %vm1368_vm6, %v2536_v18 }
0x2c9e   :  { %v2428_v39 = vpop.permute.xlu1 %2427 }
0x2c9f   :  { %2676 = vmatmul.mubr.msk.f32.gmra.mrb[44].mxu0 %vm253_vm4, %v2428_v39 }
0x2d6f   :  { %v2621_v5 = vpop.f32.mrb[48].mxu1 }
0x2d70   :  { %v2622_v59 = vadd.f32 %v2677_v0, %v2621_v5  ;;  %v2706_v10 = vpop.f32.mrb[49].mxu1 }
0x2d72   :  { %2626 = vst.msk [vmem:[%s3800_s9] sm:$0xff] %vm2625_vm8, %v2622_v59  ;;  %v2504_v13 = vpop.f32.mrb[44].mxu0 }
0x2d73   :  { %v2505_v43 = vpop.f32.mrb[45].mxu0 }
0x2d74   :  { %2631 = vsyncpa [#allocation5], 1 }
0x2d75   :  { %2632 = vsyncpa [#allocation7], 1 }

</bundles_post_ra>
